<compile_context>
chip_gen: v7x
topology: tpu7x:2x2x1
jax: 0.10.0
libtpu: 0.0.40
codegen_flags: <defaults>
</compile_context>

<pallas_src>
import functools

import jax
import jax.numpy as jnp
from jax import lax
from jax.experimental import pallas as pl
from jax.experimental.pallas import tpu as pltpu


def _fce_kernel(f_ref, whcat_ref, gw_ref, wihf_ref, b_ref, mask_ref, h_out_ref,
                *, num_steps, k_pad):
    """One grid point = one tile of N rows; K-step recurrence runs in-kernel."""
    f = f_ref[...].astype(jnp.float32)            # (bn, D)
    W_h_cat = whcat_ref[...]                      # (D, K_pad + 4D)  = [G^T_pad | W_hh^T]
    GW = gw_ref[...]                              # (K_pad, 4D)      = pad(G @ W_ih_r^T)
    mask = mask_ref[...]                          # (1, K_pad)       0 valid / -1e30 pad
    D = f.shape[1]

    # Loop-invariant input projection: f @ W_ih_f^T + (b_ih + b_hh).
    pre_gates = (jnp.dot(f, wihf_ref[...], preferred_element_type=jnp.float32)
                 + b_ref[...])                    # (bn, 4D)

    def step(_, carry):
        h, c = carry
        # Single fused matmul gives both attention logits (h @ G^T) and the
        # hidden-state gate contribution (h @ W_hh^T).
        hw = jnp.dot(h, W_h_cat, preferred_element_type=jnp.float32)  # (bn, K_pad+4D)

        logit = hw[:, :k_pad] + mask              # padded cols -> -1e30
        m = jnp.max(logit, axis=1, keepdims=True)
        e = jnp.exp(logit - m)
        a = e * pl.reciprocal(jnp.sum(e, axis=1, keepdims=True), approx=True)

        # r @ W_ih_r fused by associativity: (a @ G) @ W_ih_r == a @ GW.
        gates = (pre_gates
                 + jnp.dot(a, GW, preferred_element_type=jnp.float32)
                 + hw[:, k_pad:])                 # (bn, 4D)

        i_g = jax.nn.sigmoid(gates[:, 0 * D:1 * D])
        f_g = jax.nn.sigmoid(gates[:, 1 * D:2 * D])
        g_g = jnp.tanh(gates[:, 2 * D:3 * D])
        o_g = jax.nn.sigmoid(gates[:, 3 * D:4 * D])
        c_new = f_g * c + i_g * g_g
        h_new = o_g * jnp.tanh(c_new) + f         # "+ f" per the reference loop
        return (h_new, c_new)

    h_final, _ = lax.fori_loop(0, num_steps, step, (f, jnp.zeros_like(f)),
                               unroll=True)
    h_out_ref[...] = h_final.astype(h_out_ref.dtype)


def fully_contextual_embedding(f, G, W_ih, W_hh, b_ih, b_hh, *, block_n=128):
    """f: (N, D), G: (K, D); LSTMCell params in PyTorch layout:
       W_ih: (4D, 2D), W_hh: (4D, D), b_ih/b_hh: (4D,)."""
    N, D = f.shape
    K = G.shape[0]
    K_pad = max(128, ((K + 127) // 128) * 128)    # lane-aligned slice boundary

    # Pre-transpose / split / fuse weights in the wrapper (one-time XLA cost).
    W_ih_f = jnp.transpose(W_ih[:, :D])           # (D, 4D)  acts on f part of x
    W_ih_r = jnp.transpose(W_ih[:, D:])           # (D, 4D)  acts on r part of x
    W_hh_T = jnp.transpose(W_hh)                  # (D, 4D)
    b = (b_ih + b_hh).reshape(1, 4 * D).astype(jnp.float32)

    GT_pad = jnp.pad(jnp.transpose(G), ((0, 0), (0, K_pad - K)))     # (D, K_pad)
    W_h_cat = jnp.concatenate([GT_pad, W_hh_T], axis=1)              # (D, K_pad+4D)
    GW_pad = jnp.pad(jnp.dot(G, W_ih_r), ((0, K_pad - K), (0, 0)))   # (K_pad, 4D)
    mask = jnp.where(jnp.arange(K_pad) < K, 0.0, -1e30
                     ).astype(jnp.float32).reshape(1, K_pad)

    # Tile N across a parallel grid axis (rows are independent).
    bn = block_n if (N % block_n == 0) else N
    grid = (N // bn,)

    kernel = functools.partial(_fce_kernel, num_steps=K, k_pad=K_pad)
    resident = lambda shape: pl.BlockSpec(shape, lambda i: (0,) * len(shape))

    # TODO(synk): for very large D/N the weight-resident design needs an explicit
    # vmem_limit_bytes / K-tiling guard (v7x has only 64 MiB VMEM).
    return pl.pallas_call(
        kernel,
        out_shape=jax.ShapeDtypeStruct((N, D), f.dtype),
        grid=grid,
        in_specs=[
            pl.BlockSpec((bn, D), lambda i: (i, 0)),   # f tile
            resident(W_h_cat.shape),                   # [G^T | W_hh^T]
            resident(GW_pad.shape),                    # G @ W_ih_r^T
            resident(W_ih_f.shape),
            resident(b.shape),
            resident(mask.shape),
        ],
        out_specs=pl.BlockSpec((bn, D), lambda i: (i, 0)),
        compiler_params=pltpu.CompilerParams(
            dimension_semantics=("parallel",)),
    )(f, W_h_cat, GW_pad, W_ih_f, b, mask)


def _reference(f, G, W_ih, W_hh, b_ih, b_hh):
    """Pure-JAX reference mirroring the PyTorch forward exactly."""
    N, D = f.shape
    h = f
    c = jnp.zeros_like(f)
    for _ in range(G.shape[0]):
        logit = h @ G.T
        a = jax.nn.softmax(logit, axis=1)
        r = a @ G
        x = jnp.concatenate([f, r], axis=1)
        gates = x @ W_ih.T + b_ih + h @ W_hh.T + b_hh
        i_g = jax.nn.sigmoid(gates[:, 0 * D:1 * D])
        f_g = jax.nn.sigmoid(gates[:, 1 * D:2 * D])
        g_g = jnp.tanh(gates[:, 2 * D:3 * D])
        o_g = jax.nn.sigmoid(gates[:, 3 * D:4 * D])
        c = f_g * c + i_g * g_g
        h = o_g * jnp.tanh(c)
        h = h + f
    return h


if __name__ == "__main__":
    feat_dim = 32   # D
    N = 2           # batch (query set size)
    K = 8           # support set size (G rows)

    key = jax.random.PRNGKey(0)
    kf, kg, k1, k2, k3, k4 = jax.random.split(key, 6)

    f = jax.random.normal(kf, (N, feat_dim), dtype=jnp.float32)
    G = jax.random.normal(kg, (K, feat_dim), dtype=jnp.float32)

    # Deterministic LSTMCell params, PyTorch-style uniform(-1/sqrt(D), 1/sqrt(D)).
    bound = 1.0 / jnp.sqrt(jnp.float32(feat_dim))
    W_ih = jax.random.uniform(k1, (4 * feat_dim, 2 * feat_dim),
                              minval=-bound, maxval=bound, dtype=jnp.float32)
    W_hh = jax.random.uniform(k2, (4 * feat_dim, feat_dim),
                              minval=-bound, maxval=bound, dtype=jnp.float32)
    b_ih = jax.random.uniform(k3, (4 * feat_dim,),
                              minval=-bound, maxval=bound, dtype=jnp.float32)
    b_hh = jax.random.uniform(k4, (4 * feat_dim,),
                              minval=-bound, maxval=bound, dtype=jnp.float32)

    out = fully_contextual_embedding(f, G, W_ih, W_hh, b_ih, b_hh)
    out = jax.block_until_ready(out)

    ref = _reference(f, G, W_ih, W_hh, b_ih, b_hh)
    assert out.shape == (N, feat_dim)
    # Tolerance accounts for the a@(G@W) reassociation and approx reciprocal.
    assert jnp.allclose(out, ref, atol=2e-3, rtol=2e-3), (
        "mismatch vs reference, max abs diff = "
        f"{float(jnp.max(jnp.abs(out - ref)))}")

    print("KERNEL_OK")
</pallas_src>

<mosaic_0001>
module attributes {stable_mosaic.version = 11 : i64} {
  func.func @_fce_kernel(%arg0: i32, %arg1: memref<2x32xf32, #tpu.memory_space<vmem>>, %arg2: memref<32x256xf32, #tpu.memory_space<vmem>>, %arg3: memref<128x128xf32, #tpu.memory_space<vmem>>, %arg4: memref<32x128xf32, #tpu.memory_space<vmem>>, %arg5: memref<1x128xf32, #tpu.memory_space<vmem>>, %arg6: memref<1x128xf32, #tpu.memory_space<vmem>>, %arg7: memref<2x32xf32, #tpu.memory_space<vmem>>) attributes {dimension_semantics = [#tpu.dimension_semantics<parallel>], iteration_bounds = array<i64: 1>, scalar_prefetch = 0 : i64, scratch_operands = 0 : i64, tpu.core_type = #tpu.core_type<tc>, window_params = [{transform_indices = @transform_0, window_bounds = array<i64: 2, 32>}, {pipeline_mode = #tpu.pipeline_mode<synchronous>, transform_indices = @transform_1, window_bounds = array<i64: 32, 256>}, {pipeline_mode = #tpu.pipeline_mode<synchronous>, transform_indices = @transform_2, window_bounds = array<i64: 128, 128>}, {pipeline_mode = #tpu.pipeline_mode<synchronous>, transform_indices = @transform_3, window_bounds = array<i64: 32, 128>}, {pipeline_mode = #tpu.pipeline_mode<synchronous>, transform_indices = @transform_4, window_bounds = array<i64: 1, 128>}, {pipeline_mode = #tpu.pipeline_mode<synchronous>, transform_indices = @transform_5, window_bounds = array<i64: 1, 128>}, {transform_indices = @transform_6, window_bounds = array<i64: 2, 32>}]} {
    %c0 = arith.constant 0 : index
    %c0_0 = arith.constant 0 : index
    %0 = vector.load %arg1[%c0, %c0_0] : memref<2x32xf32, #tpu.memory_space<vmem>>, vector<2x32xf32>
    %c0_1 = arith.constant 0 : index
    %c0_2 = arith.constant 0 : index
    %1 = vector.load %arg2[%c0_1, %c0_2] : memref<32x256xf32, #tpu.memory_space<vmem>>, vector<32x256xf32>
    %c0_3 = arith.constant 0 : index
    %c0_4 = arith.constant 0 : index
    %2 = vector.load %arg3[%c0_3, %c0_4] : memref<128x128xf32, #tpu.memory_space<vmem>>, vector<128x128xf32>
    %c0_5 = arith.constant 0 : index
    %c0_6 = arith.constant 0 : index
    %3 = vector.load %arg6[%c0_5, %c0_6] : memref<1x128xf32, #tpu.memory_space<vmem>>, vector<1x128xf32>
    %c0_7 = arith.constant 0 : index
    %c0_8 = arith.constant 0 : index
    %4 = vector.load %arg4[%c0_7, %c0_8] : memref<32x128xf32, #tpu.memory_space<vmem>>, vector<32x128xf32>
    %cst = arith.constant dense<0.000000e+00> : vector<2x128xf32>
    %5 = tpu.matmul %0, %4, %cst {dimension_numbers = #tpu.dot_dimension_numbers<[1], [0], [0], [1], [0, 0, 1, 1], [], []>} : vector<2x32xf32>, vector<32x128xf32>, vector<2x128xf32> -> vector<2x128xf32>
    %c0_9 = arith.constant 0 : index
    %c0_10 = arith.constant 0 : index
    %6 = vector.load %arg5[%c0_9, %c0_10] : memref<1x128xf32, #tpu.memory_space<vmem>>, vector<1x128xf32>
    %7 = vector.broadcast %6 : vector<1x128xf32> to vector<2x128xf32>
    %8 = arith.addf %5, %7 : vector<2x128xf32>
    %cst_11 = arith.constant 0.000000e+00 : f32
    %9 = vector.broadcast %cst_11 : f32 to vector<2x32xf32>
    %c0_i32 = arith.constant 0 : i32
    %cst_12 = arith.constant dense<0.000000e+00> : vector<2x256xf32>
    %10 = tpu.matmul %0, %1, %cst_12 {dimension_numbers = #tpu.dot_dimension_numbers<[1], [0], [0], [1], [0, 0, 1, 1], [], []>} : vector<2x32xf32>, vector<32x256xf32>, vector<2x256xf32> -> vector<2x256xf32>
    %11 = vector.extract_strided_slice %10 {offsets = [0, 0], sizes = [2, 128], strides = [1, 1]} : vector<2x256xf32> to vector<2x128xf32>
    %12 = vector.broadcast %3 : vector<1x128xf32> to vector<2x128xf32>
    %13 = arith.addf %11, %12 : vector<2x128xf32>
    %cst_13 = arith.constant dense<0xFF800000> : vector<2xf32>
    %14 = vector.multi_reduction <maximumf>, %13, %cst_13 [1] : vector<2x128xf32> to vector<2xf32>
    %15 = vector.shape_cast %14 : vector<2xf32> to vector<2x1xf32>
    %16 = vector.broadcast %15 : vector<2x1xf32> to vector<2x128xf32>
    %17 = arith.subf %13, %16 : vector<2x128xf32>
    %18 = math.exp %17 : vector<2x128xf32>
    %cst_14 = arith.constant dense<0.000000e+00> : vector<2xf32>
    %19 = vector.multi_reduction <add>, %18, %cst_14 [1] : vector<2x128xf32> to vector<2xf32>
    %20 = vector.shape_cast %19 : vector<2xf32> to vector<2x1xf32>
    %21 = tpu.reciprocal %20 {approx = true} : vector<2x1xf32> -> vector<2x1xf32>
    %22 = vector.broadcast %21 : vector<2x1xf32> to vector<2x128xf32>
    %23 = arith.mulf %18, %22 : vector<2x128xf32>
    %cst_15 = arith.constant dense<0.000000e+00> : vector<2x128xf32>
    %24 = tpu.matmul %23, %2, %cst_15 {dimension_numbers = #tpu.dot_dimension_numbers<[1], [0], [0], [1], [0, 0, 1, 1], [], []>} : vector<2x128xf32>, vector<128x128xf32>, vector<2x128xf32> -> vector<2x128xf32>
    %25 = arith.addf %8, %24 : vector<2x128xf32>
    %26 = vector.extract_strided_slice %10 {offsets = [0, 128], sizes = [2, 128], strides = [1, 1]} : vector<2x256xf32> to vector<2x128xf32>
    %27 = arith.addf %25, %26 : vector<2x128xf32>
    %28 = vector.extract_strided_slice %27 {offsets = [0, 0], sizes = [2, 32], strides = [1, 1]} : vector<2x128xf32> to vector<2x32xf32>
    %29 = arith.negf %28 : vector<2x32xf32>
    %30 = math.exp %29 : vector<2x32xf32>
    %cst_16 = arith.constant 1.000000e+00 : f32
    %31 = vector.broadcast %cst_16 : f32 to vector<2x32xf32>
    %32 = arith.addf %31, %30 : vector<2x32xf32>
    %33 = arith.divf %31, %32 : vector<2x32xf32>
    %34 = vector.extract_strided_slice %27 {offsets = [0, 32], sizes = [2, 32], strides = [1, 1]} : vector<2x128xf32> to vector<2x32xf32>
    %35 = arith.negf %34 : vector<2x32xf32>
    %36 = math.exp %35 : vector<2x32xf32>
    %cst_17 = arith.constant 1.000000e+00 : f32
    %37 = vector.broadcast %cst_17 : f32 to vector<2x32xf32>
    %38 = arith.addf %37, %36 : vector<2x32xf32>
    %39 = arith.divf %37, %38 : vector<2x32xf32>
    %40 = vector.extract_strided_slice %27 {offsets = [0, 64], sizes = [2, 32], strides = [1, 1]} : vector<2x128xf32> to vector<2x32xf32>
    %41 = math.tanh %40 : vector<2x32xf32>
    %42 = vector.extract_strided_slice %27 {offsets = [0, 96], sizes = [2, 32], strides = [1, 1]} : vector<2x128xf32> to vector<2x32xf32>
    %43 = arith.negf %42 : vector<2x32xf32>
    %44 = math.exp %43 : vector<2x32xf32>
    %cst_18 = arith.constant 1.000000e+00 : f32
    %45 = vector.broadcast %cst_18 : f32 to vector<2x32xf32>
    %46 = arith.addf %45, %44 : vector<2x32xf32>
    %47 = arith.divf %45, %46 : vector<2x32xf32>
    %48 = arith.mulf %39, %9 : vector<2x32xf32>
    %49 = arith.mulf %33, %41 : vector<2x32xf32>
    %50 = arith.addf %48, %49 : vector<2x32xf32>
    %51 = math.tanh %50 : vector<2x32xf32>
    %52 = arith.mulf %47, %51 : vector<2x32xf32>
    %53 = arith.addf %52, %0 : vector<2x32xf32>
    %c1_i32 = arith.constant 1 : i32
    %cst_19 = arith.constant dense<0.000000e+00> : vector<2x256xf32>
    %54 = tpu.matmul %53, %1, %cst_19 {dimension_numbers = #tpu.dot_dimension_numbers<[1], [0], [0], [1], [0, 0, 1, 1], [], []>} : vector<2x32xf32>, vector<32x256xf32>, vector<2x256xf32> -> vector<2x256xf32>
    %55 = vector.extract_strided_slice %54 {offsets = [0, 0], sizes = [2, 128], strides = [1, 1]} : vector<2x256xf32> to vector<2x128xf32>
    %56 = vector.broadcast %3 : vector<1x128xf32> to vector<2x128xf32>
    %57 = arith.addf %55, %56 : vector<2x128xf32>
    %cst_20 = arith.constant dense<0xFF800000> : vector<2xf32>
    %58 = vector.multi_reduction <maximumf>, %57, %cst_20 [1] : vector<2x128xf32> to vector<2xf32>
    %59 = vector.shape_cast %58 : vector<2xf32> to vector<2x1xf32>
    %60 = vector.broadcast %59 : vector<2x1xf32> to vector<2x128xf32>
    %61 = arith.subf %57, %60 : vector<2x128xf32>
    %62 = math.exp %61 : vector<2x128xf32>
    %cst_21 = arith.constant dense<0.000000e+00> : vector<2xf32>
    %63 = vector.multi_reduction <add>, %62, %cst_21 [1] : vector<2x128xf32> to vector<2xf32>
    %64 = vector.shape_cast %63 : vector<2xf32> to vector<2x1xf32>
    %65 = tpu.reciprocal %64 {approx = true} : vector<2x1xf32> -> vector<2x1xf32>
    %66 = vector.broadcast %65 : vector<2x1xf32> to vector<2x128xf32>
    %67 = arith.mulf %62, %66 : vector<2x128xf32>
    %cst_22 = arith.constant dense<0.000000e+00> : vector<2x128xf32>
    %68 = tpu.matmul %67, %2, %cst_22 {dimension_numbers = #tpu.dot_dimension_numbers<[1], [0], [0], [1], [0, 0, 1, 1], [], []>} : vector<2x128xf32>, vector<128x128xf32>, vector<2x128xf32> -> vector<2x128xf32>
    %69 = arith.addf %8, %68 : vector<2x128xf32>
    %70 = vector.extract_strided_slice %54 {offsets = [0, 128], sizes = [2, 128], strides = [1, 1]} : vector<2x256xf32> to vector<2x128xf32>
    %71 = arith.addf %69, %70 : vector<2x128xf32>
    %72 = vector.extract_strided_slice %71 {offsets = [0, 0], sizes = [2, 32], strides = [1, 1]} : vector<2x128xf32> to vector<2x32xf32>
    %73 = arith.negf %72 : vector<2x32xf32>
    %74 = math.exp %73 : vector<2x32xf32>
    %cst_23 = arith.constant 1.000000e+00 : f32
    %75 = vector.broadcast %cst_23 : f32 to vector<2x32xf32>
    %76 = arith.addf %75, %74 : vector<2x32xf32>
    %77 = arith.divf %75, %76 : vector<2x32xf32>
    %78 = vector.extract_strided_slice %71 {offsets = [0, 32], sizes = [2, 32], strides = [1, 1]} : vector<2x128xf32> to vector<2x32xf32>
    %79 = arith.negf %78 : vector<2x32xf32>
    %80 = math.exp %79 : vector<2x32xf32>
    %cst_24 = arith.constant 1.000000e+00 : f32
    %81 = vector.broadcast %cst_24 : f32 to vector<2x32xf32>
    %82 = arith.addf %81, %80 : vector<2x32xf32>
    %83 = arith.divf %81, %82 : vector<2x32xf32>
    %84 = vector.extract_strided_slice %71 {offsets = [0, 64], sizes = [2, 32], strides = [1, 1]} : vector<2x128xf32> to vector<2x32xf32>
    %85 = math.tanh %84 : vector<2x32xf32>
    %86 = vector.extract_strided_slice %71 {offsets = [0, 96], sizes = [2, 32], strides = [1, 1]} : vector<2x128xf32> to vector<2x32xf32>
    %87 = arith.negf %86 : vector<2x32xf32>
    %88 = math.exp %87 : vector<2x32xf32>
    %cst_25 = arith.constant 1.000000e+00 : f32
    %89 = vector.broadcast %cst_25 : f32 to vector<2x32xf32>
    %90 = arith.addf %89, %88 : vector<2x32xf32>
    %91 = arith.divf %89, %90 : vector<2x32xf32>
    %92 = arith.mulf %83, %50 : vector<2x32xf32>
    %93 = arith.mulf %77, %85 : vector<2x32xf32>
    %94 = arith.addf %92, %93 : vector<2x32xf32>
    %95 = math.tanh %94 : vector<2x32xf32>
    %96 = arith.mulf %91, %95 : vector<2x32xf32>
    %97 = arith.addf %96, %0 : vector<2x32xf32>
    %c2_i32 = arith.constant 2 : i32
    %cst_26 = arith.constant dense<0.000000e+00> : vector<2x256xf32>
    %98 = tpu.matmul %97, %1, %cst_26 {dimension_numbers = #tpu.dot_dimension_numbers<[1], [0], [0], [1], [0, 0, 1, 1], [], []>} : vector<2x32xf32>, vector<32x256xf32>, vector<2x256xf32> -> vector<2x256xf32>
    %99 = vector.extract_strided_slice %98 {offsets = [0, 0], sizes = [2, 128], strides = [1, 1]} : vector<2x256xf32> to vector<2x128xf32>
    %100 = vector.broadcast %3 : vector<1x128xf32> to vector<2x128xf32>
    %101 = arith.addf %99, %100 : vector<2x128xf32>
    %cst_27 = arith.constant dense<0xFF800000> : vector<2xf32>
    %102 = vector.multi_reduction <maximumf>, %101, %cst_27 [1] : vector<2x128xf32> to vector<2xf32>
    %103 = vector.shape_cast %102 : vector<2xf32> to vector<2x1xf32>
    %104 = vector.broadcast %103 : vector<2x1xf32> to vector<2x128xf32>
    %105 = arith.subf %101, %104 : vector<2x128xf32>
    %106 = math.exp %105 : vector<2x128xf32>
    %cst_28 = arith.constant dense<0.000000e+00> : vector<2xf32>
    %107 = vector.multi_reduction <add>, %106, %cst_28 [1] : vector<2x128xf32> to vector<2xf32>
    %108 = vector.shape_cast %107 : vector<2xf32> to vector<2x1xf32>
    %109 = tpu.reciprocal %108 {approx = true} : vector<2x1xf32> -> vector<2x1xf32>
    %110 = vector.broadcast %109 : vector<2x1xf32> to vector<2x128xf32>
    %111 = arith.mulf %106, %110 : vector<2x128xf32>
    %cst_29 = arith.constant dense<0.000000e+00> : vector<2x128xf32>
    %112 = tpu.matmul %111, %2, %cst_29 {dimension_numbers = #tpu.dot_dimension_numbers<[1], [0], [0], [1], [0, 0, 1, 1], [], []>} : vector<2x128xf32>, vector<128x128xf32>, vector<2x128xf32> -> vector<2x128xf32>
    %113 = arith.addf %8, %112 : vector<2x128xf32>
    %114 = vector.extract_strided_slice %98 {offsets = [0, 128], sizes = [2, 128], strides = [1, 1]} : vector<2x256xf32> to vector<2x128xf32>
    %115 = arith.addf %113, %114 : vector<2x128xf32>
    %116 = vector.extract_strided_slice %115 {offsets = [0, 0], sizes = [2, 32], strides = [1, 1]} : vector<2x128xf32> to vector<2x32xf32>
    %117 = arith.negf %116 : vector<2x32xf32>
    %118 = math.exp %117 : vector<2x32xf32>
    %cst_30 = arith.constant 1.000000e+00 : f32
    %119 = vector.broadcast %cst_30 : f32 to vector<2x32xf32>
    %120 = arith.addf %119, %118 : vector<2x32xf32>
    %121 = arith.divf %119, %120 : vector<2x32xf32>
    %122 = vector.extract_strided_slice %115 {offsets = [0, 32], sizes = [2, 32], strides = [1, 1]} : vector<2x128xf32> to vector<2x32xf32>
    %123 = arith.negf %122 : vector<2x32xf32>
    %124 = math.exp %123 : vector<2x32xf32>
    %cst_31 = arith.constant 1.000000e+00 : f32
    %125 = vector.broadcast %cst_31 : f32 to vector<2x32xf32>
    %126 = arith.addf %125, %124 : vector<2x32xf32>
    %127 = arith.divf %125, %126 : vector<2x32xf32>
    %128 = vector.extract_strided_slice %115 {offsets = [0, 64], sizes = [2, 32], strides = [1, 1]} : vector<2x128xf32> to vector<2x32xf32>
    %129 = math.tanh %128 : vector<2x32xf32>
    %130 = vector.extract_strided_slice %115 {offsets = [0, 96], sizes = [2, 32], strides = [1, 1]} : vector<2x128xf32> to vector<2x32xf32>
    %131 = arith.negf %130 : vector<2x32xf32>
    %132 = math.exp %131 : vector<2x32xf32>
    %cst_32 = arith.constant 1.000000e+00 : f32
    %133 = vector.broadcast %cst_32 : f32 to vector<2x32xf32>
    %134 = arith.addf %133, %132 : vector<2x32xf32>
    %135 = arith.divf %133, %134 : vector<2x32xf32>
    %136 = arith.mulf %127, %94 : vector<2x32xf32>
    %137 = arith.mulf %121, %129 : vector<2x32xf32>
    %138 = arith.addf %136, %137 : vector<2x32xf32>
    %139 = math.tanh %138 : vector<2x32xf32>
    %140 = arith.mulf %135, %139 : vector<2x32xf32>
    %141 = arith.addf %140, %0 : vector<2x32xf32>
    %c3_i32 = arith.constant 3 : i32
    %cst_33 = arith.constant dense<0.000000e+00> : vector<2x256xf32>
    %142 = tpu.matmul %141, %1, %cst_33 {dimension_numbers = #tpu.dot_dimension_numbers<[1], [0], [0], [1], [0, 0, 1, 1], [], []>} : vector<2x32xf32>, vector<32x256xf32>, vector<2x256xf32> -> vector<2x256xf32>
    %143 = vector.extract_strided_slice %142 {offsets = [0, 0], sizes = [2, 128], strides = [1, 1]} : vector<2x256xf32> to vector<2x128xf32>
    %144 = vector.broadcast %3 : vector<1x128xf32> to vector<2x128xf32>
    %145 = arith.addf %143, %144 : vector<2x128xf32>
    %cst_34 = arith.constant dense<0xFF800000> : vector<2xf32>
    %146 = vector.multi_reduction <maximumf>, %145, %cst_34 [1] : vector<2x128xf32> to vector<2xf32>
    %147 = vector.shape_cast %146 : vector<2xf32> to vector<2x1xf32>
    %148 = vector.broadcast %147 : vector<2x1xf32> to vector<2x128xf32>
    %149 = arith.subf %145, %148 : vector<2x128xf32>
    %150 = math.exp %149 : vector<2x128xf32>
    %cst_35 = arith.constant dense<0.000000e+00> : vector<2xf32>
    %151 = vector.multi_reduction <add>, %150, %cst_35 [1] : vector<2x128xf32> to vector<2xf32>
    %152 = vector.shape_cast %151 : vector<2xf32> to vector<2x1xf32>
    %153 = tpu.reciprocal %152 {approx = true} : vector<2x1xf32> -> vector<2x1xf32>
    %154 = vector.broadcast %153 : vector<2x1xf32> to vector<2x128xf32>
    %155 = arith.mulf %150, %154 : vector<2x128xf32>
    %cst_36 = arith.constant dense<0.000000e+00> : vector<2x128xf32>
    %156 = tpu.matmul %155, %2, %cst_36 {dimension_numbers = #tpu.dot_dimension_numbers<[1], [0], [0], [1], [0, 0, 1, 1], [], []>} : vector<2x128xf32>, vector<128x128xf32>, vector<2x128xf32> -> vector<2x128xf32>
    %157 = arith.addf %8, %156 : vector<2x128xf32>
    %158 = vector.extract_strided_slice %142 {offsets = [0, 128], sizes = [2, 128], strides = [1, 1]} : vector<2x256xf32> to vector<2x128xf32>
    %159 = arith.addf %157, %158 : vector<2x128xf32>
    %160 = vector.extract_strided_slice %159 {offsets = [0, 0], sizes = [2, 32], strides = [1, 1]} : vector<2x128xf32> to vector<2x32xf32>
    %161 = arith.negf %160 : vector<2x32xf32>
    %162 = math.exp %161 : vector<2x32xf32>
    %cst_37 = arith.constant 1.000000e+00 : f32
    %163 = vector.broadcast %cst_37 : f32 to vector<2x32xf32>
    %164 = arith.addf %163, %162 : vector<2x32xf32>
    %165 = arith.divf %163, %164 : vector<2x32xf32>
    %166 = vector.extract_strided_slice %159 {offsets = [0, 32], sizes = [2, 32], strides = [1, 1]} : vector<2x128xf32> to vector<2x32xf32>
    %167 = arith.negf %166 : vector<2x32xf32>
    %168 = math.exp %167 : vector<2x32xf32>
    %cst_38 = arith.constant 1.000000e+00 : f32
    %169 = vector.broadcast %cst_38 : f32 to vector<2x32xf32>
    %170 = arith.addf %169, %168 : vector<2x32xf32>
    %171 = arith.divf %169, %170 : vector<2x32xf32>
    %172 = vector.extract_strided_slice %159 {offsets = [0, 64], sizes = [2, 32], strides = [1, 1]} : vector<2x128xf32> to vector<2x32xf32>
    %173 = math.tanh %172 : vector<2x32xf32>
    %174 = vector.extract_strided_slice %159 {offsets = [0, 96], sizes = [2, 32], strides = [1, 1]} : vector<2x128xf32> to vector<2x32xf32>
    %175 = arith.negf %174 : vector<2x32xf32>
    %176 = math.exp %175 : vector<2x32xf32>
    %cst_39 = arith.constant 1.000000e+00 : f32
    %177 = vector.broadcast %cst_39 : f32 to vector<2x32xf32>
    %178 = arith.addf %177, %176 : vector<2x32xf32>
    %179 = arith.divf %177, %178 : vector<2x32xf32>
    %180 = arith.mulf %171, %138 : vector<2x32xf32>
    %181 = arith.mulf %165, %173 : vector<2x32xf32>
    %182 = arith.addf %180, %181 : vector<2x32xf32>
    %183 = math.tanh %182 : vector<2x32xf32>
    %184 = arith.mulf %179, %183 : vector<2x32xf32>
    %185 = arith.addf %184, %0 : vector<2x32xf32>
    %c4_i32 = arith.constant 4 : i32
    %cst_40 = arith.constant dense<0.000000e+00> : vector<2x256xf32>
    %186 = tpu.matmul %185, %1, %cst_40 {dimension_numbers = #tpu.dot_dimension_numbers<[1], [0], [0], [1], [0, 0, 1, 1], [], []>} : vector<2x32xf32>, vector<32x256xf32>, vector<2x256xf32> -> vector<2x256xf32>
    %187 = vector.extract_strided_slice %186 {offsets = [0, 0], sizes = [2, 128], strides = [1, 1]} : vector<2x256xf32> to vector<2x128xf32>
    %188 = vector.broadcast %3 : vector<1x128xf32> to vector<2x128xf32>
    %189 = arith.addf %187, %188 : vector<2x128xf32>
    %cst_41 = arith.constant dense<0xFF800000> : vector<2xf32>
    %190 = vector.multi_reduction <maximumf>, %189, %cst_41 [1] : vector<2x128xf32> to vector<2xf32>
    %191 = vector.shape_cast %190 : vector<2xf32> to vector<2x1xf32>
    %192 = vector.broadcast %191 : vector<2x1xf32> to vector<2x128xf32>
    %193 = arith.subf %189, %192 : vector<2x128xf32>
    %194 = math.exp %193 : vector<2x128xf32>
    %cst_42 = arith.constant dense<0.000000e+00> : vector<2xf32>
    %195 = vector.multi_reduction <add>, %194, %cst_42 [1] : vector<2x128xf32> to vector<2xf32>
    %196 = vector.shape_cast %195 : vector<2xf32> to vector<2x1xf32>
    %197 = tpu.reciprocal %196 {approx = true} : vector<2x1xf32> -> vector<2x1xf32>
    %198 = vector.broadcast %197 : vector<2x1xf32> to vector<2x128xf32>
    %199 = arith.mulf %194, %198 : vector<2x128xf32>
    %cst_43 = arith.constant dense<0.000000e+00> : vector<2x128xf32>
    %200 = tpu.matmul %199, %2, %cst_43 {dimension_numbers = #tpu.dot_dimension_numbers<[1], [0], [0], [1], [0, 0, 1, 1], [], []>} : vector<2x128xf32>, vector<128x128xf32>, vector<2x128xf32> -> vector<2x128xf32>
    %201 = arith.addf %8, %200 : vector<2x128xf32>
    %202 = vector.extract_strided_slice %186 {offsets = [0, 128], sizes = [2, 128], strides = [1, 1]} : vector<2x256xf32> to vector<2x128xf32>
    %203 = arith.addf %201, %202 : vector<2x128xf32>
    %204 = vector.extract_strided_slice %203 {offsets = [0, 0], sizes = [2, 32], strides = [1, 1]} : vector<2x128xf32> to vector<2x32xf32>
    %205 = arith.negf %204 : vector<2x32xf32>
    %206 = math.exp %205 : vector<2x32xf32>
    %cst_44 = arith.constant 1.000000e+00 : f32
    %207 = vector.broadcast %cst_44 : f32 to vector<2x32xf32>
    %208 = arith.addf %207, %206 : vector<2x32xf32>
    %209 = arith.divf %207, %208 : vector<2x32xf32>
    %210 = vector.extract_strided_slice %203 {offsets = [0, 32], sizes = [2, 32], strides = [1, 1]} : vector<2x128xf32> to vector<2x32xf32>
    %211 = arith.negf %210 : vector<2x32xf32>
    %212 = math.exp %211 : vector<2x32xf32>
    %cst_45 = arith.constant 1.000000e+00 : f32
    %213 = vector.broadcast %cst_45 : f32 to vector<2x32xf32>
    %214 = arith.addf %213, %212 : vector<2x32xf32>
    %215 = arith.divf %213, %214 : vector<2x32xf32>
    %216 = vector.extract_strided_slice %203 {offsets = [0, 64], sizes = [2, 32], strides = [1, 1]} : vector<2x128xf32> to vector<2x32xf32>
    %217 = math.tanh %216 : vector<2x32xf32>
    %218 = vector.extract_strided_slice %203 {offsets = [0, 96], sizes = [2, 32], strides = [1, 1]} : vector<2x128xf32> to vector<2x32xf32>
    %219 = arith.negf %218 : vector<2x32xf32>
    %220 = math.exp %219 : vector<2x32xf32>
    %cst_46 = arith.constant 1.000000e+00 : f32
    %221 = vector.broadcast %cst_46 : f32 to vector<2x32xf32>
    %222 = arith.addf %221, %220 : vector<2x32xf32>
    %223 = arith.divf %221, %222 : vector<2x32xf32>
    %224 = arith.mulf %215, %182 : vector<2x32xf32>
    %225 = arith.mulf %209, %217 : vector<2x32xf32>
    %226 = arith.addf %224, %225 : vector<2x32xf32>
    %227 = math.tanh %226 : vector<2x32xf32>
    %228 = arith.mulf %223, %227 : vector<2x32xf32>
    %229 = arith.addf %228, %0 : vector<2x32xf32>
    %c5_i32 = arith.constant 5 : i32
    %cst_47 = arith.constant dense<0.000000e+00> : vector<2x256xf32>
    %230 = tpu.matmul %229, %1, %cst_47 {dimension_numbers = #tpu.dot_dimension_numbers<[1], [0], [0], [1], [0, 0, 1, 1], [], []>} : vector<2x32xf32>, vector<32x256xf32>, vector<2x256xf32> -> vector<2x256xf32>
    %231 = vector.extract_strided_slice %230 {offsets = [0, 0], sizes = [2, 128], strides = [1, 1]} : vector<2x256xf32> to vector<2x128xf32>
    %232 = vector.broadcast %3 : vector<1x128xf32> to vector<2x128xf32>
    %233 = arith.addf %231, %232 : vector<2x128xf32>
    %cst_48 = arith.constant dense<0xFF800000> : vector<2xf32>
    %234 = vector.multi_reduction <maximumf>, %233, %cst_48 [1] : vector<2x128xf32> to vector<2xf32>
    %235 = vector.shape_cast %234 : vector<2xf32> to vector<2x1xf32>
    %236 = vector.broadcast %235 : vector<2x1xf32> to vector<2x128xf32>
    %237 = arith.subf %233, %236 : vector<2x128xf32>
    %238 = math.exp %237 : vector<2x128xf32>
    %cst_49 = arith.constant dense<0.000000e+00> : vector<2xf32>
    %239 = vector.multi_reduction <add>, %238, %cst_49 [1] : vector<2x128xf32> to vector<2xf32>
    %240 = vector.shape_cast %239 : vector<2xf32> to vector<2x1xf32>
    %241 = tpu.reciprocal %240 {approx = true} : vector<2x1xf32> -> vector<2x1xf32>
    %242 = vector.broadcast %241 : vector<2x1xf32> to vector<2x128xf32>
    %243 = arith.mulf %238, %242 : vector<2x128xf32>
    %cst_50 = arith.constant dense<0.000000e+00> : vector<2x128xf32>
    %244 = tpu.matmul %243, %2, %cst_50 {dimension_numbers = #tpu.dot_dimension_numbers<[1], [0], [0], [1], [0, 0, 1, 1], [], []>} : vector<2x128xf32>, vector<128x128xf32>, vector<2x128xf32> -> vector<2x128xf32>
    %245 = arith.addf %8, %244 : vector<2x128xf32>
    %246 = vector.extract_strided_slice %230 {offsets = [0, 128], sizes = [2, 128], strides = [1, 1]} : vector<2x256xf32> to vector<2x128xf32>
    %247 = arith.addf %245, %246 : vector<2x128xf32>
    %248 = vector.extract_strided_slice %247 {offsets = [0, 0], sizes = [2, 32], strides = [1, 1]} : vector<2x128xf32> to vector<2x32xf32>
    %249 = arith.negf %248 : vector<2x32xf32>
    %250 = math.exp %249 : vector<2x32xf32>
    %cst_51 = arith.constant 1.000000e+00 : f32
    %251 = vector.broadcast %cst_51 : f32 to vector<2x32xf32>
    %252 = arith.addf %251, %250 : vector<2x32xf32>
    %253 = arith.divf %251, %252 : vector<2x32xf32>
    %254 = vector.extract_strided_slice %247 {offsets = [0, 32], sizes = [2, 32], strides = [1, 1]} : vector<2x128xf32> to vector<2x32xf32>
    %255 = arith.negf %254 : vector<2x32xf32>
    %256 = math.exp %255 : vector<2x32xf32>
    %cst_52 = arith.constant 1.000000e+00 : f32
    %257 = vector.broadcast %cst_52 : f32 to vector<2x32xf32>
    %258 = arith.addf %257, %256 : vector<2x32xf32>
    %259 = arith.divf %257, %258 : vector<2x32xf32>
    %260 = vector.extract_strided_slice %247 {offsets = [0, 64], sizes = [2, 32], strides = [1, 1]} : vector<2x128xf32> to vector<2x32xf32>
    %261 = math.tanh %260 : vector<2x32xf32>
    %262 = vector.extract_strided_slice %247 {offsets = [0, 96], sizes = [2, 32], strides = [1, 1]} : vector<2x128xf32> to vector<2x32xf32>
    %263 = arith.negf %262 : vector<2x32xf32>
    %264 = math.exp %263 : vector<2x32xf32>
    %cst_53 = arith.constant 1.000000e+00 : f32
    %265 = vector.broadcast %cst_53 : f32 to vector<2x32xf32>
    %266 = arith.addf %265, %264 : vector<2x32xf32>
    %267 = arith.divf %265, %266 : vector<2x32xf32>
    %268 = arith.mulf %259, %226 : vector<2x32xf32>
    %269 = arith.mulf %253, %261 : vector<2x32xf32>
    %270 = arith.addf %268, %269 : vector<2x32xf32>
    %271 = math.tanh %270 : vector<2x32xf32>
    %272 = arith.mulf %267, %271 : vector<2x32xf32>
    %273 = arith.addf %272, %0 : vector<2x32xf32>
    %c6_i32 = arith.constant 6 : i32
    %cst_54 = arith.constant dense<0.000000e+00> : vector<2x256xf32>
    %274 = tpu.matmul %273, %1, %cst_54 {dimension_numbers = #tpu.dot_dimension_numbers<[1], [0], [0], [1], [0, 0, 1, 1], [], []>} : vector<2x32xf32>, vector<32x256xf32>, vector<2x256xf32> -> vector<2x256xf32>
    %275 = vector.extract_strided_slice %274 {offsets = [0, 0], sizes = [2, 128], strides = [1, 1]} : vector<2x256xf32> to vector<2x128xf32>
    %276 = vector.broadcast %3 : vector<1x128xf32> to vector<2x128xf32>
    %277 = arith.addf %275, %276 : vector<2x128xf32>
    %cst_55 = arith.constant dense<0xFF800000> : vector<2xf32>
    %278 = vector.multi_reduction <maximumf>, %277, %cst_55 [1] : vector<2x128xf32> to vector<2xf32>
    %279 = vector.shape_cast %278 : vector<2xf32> to vector<2x1xf32>
    %280 = vector.broadcast %279 : vector<2x1xf32> to vector<2x128xf32>
    %281 = arith.subf %277, %280 : vector<2x128xf32>
    %282 = math.exp %281 : vector<2x128xf32>
    %cst_56 = arith.constant dense<0.000000e+00> : vector<2xf32>
    %283 = vector.multi_reduction <add>, %282, %cst_56 [1] : vector<2x128xf32> to vector<2xf32>
    %284 = vector.shape_cast %283 : vector<2xf32> to vector<2x1xf32>
    %285 = tpu.reciprocal %284 {approx = true} : vector<2x1xf32> -> vector<2x1xf32>
    %286 = vector.broadcast %285 : vector<2x1xf32> to vector<2x128xf32>
    %287 = arith.mulf %282, %286 : vector<2x128xf32>
    %cst_57 = arith.constant dense<0.000000e+00> : vector<2x128xf32>
    %288 = tpu.matmul %287, %2, %cst_57 {dimension_numbers = #tpu.dot_dimension_numbers<[1], [0], [0], [1], [0, 0, 1, 1], [], []>} : vector<2x128xf32>, vector<128x128xf32>, vector<2x128xf32> -> vector<2x128xf32>
    %289 = arith.addf %8, %288 : vector<2x128xf32>
    %290 = vector.extract_strided_slice %274 {offsets = [0, 128], sizes = [2, 128], strides = [1, 1]} : vector<2x256xf32> to vector<2x128xf32>
    %291 = arith.addf %289, %290 : vector<2x128xf32>
    %292 = vector.extract_strided_slice %291 {offsets = [0, 0], sizes = [2, 32], strides = [1, 1]} : vector<2x128xf32> to vector<2x32xf32>
    %293 = arith.negf %292 : vector<2x32xf32>
    %294 = math.exp %293 : vector<2x32xf32>
    %cst_58 = arith.constant 1.000000e+00 : f32
    %295 = vector.broadcast %cst_58 : f32 to vector<2x32xf32>
    %296 = arith.addf %295, %294 : vector<2x32xf32>
    %297 = arith.divf %295, %296 : vector<2x32xf32>
    %298 = vector.extract_strided_slice %291 {offsets = [0, 32], sizes = [2, 32], strides = [1, 1]} : vector<2x128xf32> to vector<2x32xf32>
    %299 = arith.negf %298 : vector<2x32xf32>
    %300 = math.exp %299 : vector<2x32xf32>
    %cst_59 = arith.constant 1.000000e+00 : f32
    %301 = vector.broadcast %cst_59 : f32 to vector<2x32xf32>
    %302 = arith.addf %301, %300 : vector<2x32xf32>
    %303 = arith.divf %301, %302 : vector<2x32xf32>
    %304 = vector.extract_strided_slice %291 {offsets = [0, 64], sizes = [2, 32], strides = [1, 1]} : vector<2x128xf32> to vector<2x32xf32>
    %305 = math.tanh %304 : vector<2x32xf32>
    %306 = vector.extract_strided_slice %291 {offsets = [0, 96], sizes = [2, 32], strides = [1, 1]} : vector<2x128xf32> to vector<2x32xf32>
    %307 = arith.negf %306 : vector<2x32xf32>
    %308 = math.exp %307 : vector<2x32xf32>
    %cst_60 = arith.constant 1.000000e+00 : f32
    %309 = vector.broadcast %cst_60 : f32 to vector<2x32xf32>
    %310 = arith.addf %309, %308 : vector<2x32xf32>
    %311 = arith.divf %309, %310 : vector<2x32xf32>
    %312 = arith.mulf %303, %270 : vector<2x32xf32>
    %313 = arith.mulf %297, %305 : vector<2x32xf32>
    %314 = arith.addf %312, %313 : vector<2x32xf32>
    %315 = math.tanh %314 : vector<2x32xf32>
    %316 = arith.mulf %311, %315 : vector<2x32xf32>
    %317 = arith.addf %316, %0 : vector<2x32xf32>
    %c7_i32 = arith.constant 7 : i32
    %cst_61 = arith.constant dense<0.000000e+00> : vector<2x256xf32>
    %318 = tpu.matmul %317, %1, %cst_61 {dimension_numbers = #tpu.dot_dimension_numbers<[1], [0], [0], [1], [0, 0, 1, 1], [], []>} : vector<2x32xf32>, vector<32x256xf32>, vector<2x256xf32> -> vector<2x256xf32>
    %319 = vector.extract_strided_slice %318 {offsets = [0, 0], sizes = [2, 128], strides = [1, 1]} : vector<2x256xf32> to vector<2x128xf32>
    %320 = vector.broadcast %3 : vector<1x128xf32> to vector<2x128xf32>
    %321 = arith.addf %319, %320 : vector<2x128xf32>
    %cst_62 = arith.constant dense<0xFF800000> : vector<2xf32>
    %322 = vector.multi_reduction <maximumf>, %321, %cst_62 [1] : vector<2x128xf32> to vector<2xf32>
    %323 = vector.shape_cast %322 : vector<2xf32> to vector<2x1xf32>
    %324 = vector.broadcast %323 : vector<2x1xf32> to vector<2x128xf32>
    %325 = arith.subf %321, %324 : vector<2x128xf32>
    %326 = math.exp %325 : vector<2x128xf32>
    %cst_63 = arith.constant dense<0.000000e+00> : vector<2xf32>
    %327 = vector.multi_reduction <add>, %326, %cst_63 [1] : vector<2x128xf32> to vector<2xf32>
    %328 = vector.shape_cast %327 : vector<2xf32> to vector<2x1xf32>
    %329 = tpu.reciprocal %328 {approx = true} : vector<2x1xf32> -> vector<2x1xf32>
    %330 = vector.broadcast %329 : vector<2x1xf32> to vector<2x128xf32>
    %331 = arith.mulf %326, %330 : vector<2x128xf32>
    %cst_64 = arith.constant dense<0.000000e+00> : vector<2x128xf32>
    %332 = tpu.matmul %331, %2, %cst_64 {dimension_numbers = #tpu.dot_dimension_numbers<[1], [0], [0], [1], [0, 0, 1, 1], [], []>} : vector<2x128xf32>, vector<128x128xf32>, vector<2x128xf32> -> vector<2x128xf32>
    %333 = arith.addf %8, %332 : vector<2x128xf32>
    %334 = vector.extract_strided_slice %318 {offsets = [0, 128], sizes = [2, 128], strides = [1, 1]} : vector<2x256xf32> to vector<2x128xf32>
    %335 = arith.addf %333, %334 : vector<2x128xf32>
    %336 = vector.extract_strided_slice %335 {offsets = [0, 0], sizes = [2, 32], strides = [1, 1]} : vector<2x128xf32> to vector<2x32xf32>
    %337 = arith.negf %336 : vector<2x32xf32>
    %338 = math.exp %337 : vector<2x32xf32>
    %cst_65 = arith.constant 1.000000e+00 : f32
    %339 = vector.broadcast %cst_65 : f32 to vector<2x32xf32>
    %340 = arith.addf %339, %338 : vector<2x32xf32>
    %341 = arith.divf %339, %340 : vector<2x32xf32>
    %342 = vector.extract_strided_slice %335 {offsets = [0, 32], sizes = [2, 32], strides = [1, 1]} : vector<2x128xf32> to vector<2x32xf32>
    %343 = arith.negf %342 : vector<2x32xf32>
    %344 = math.exp %343 : vector<2x32xf32>
    %cst_66 = arith.constant 1.000000e+00 : f32
    %345 = vector.broadcast %cst_66 : f32 to vector<2x32xf32>
    %346 = arith.addf %345, %344 : vector<2x32xf32>
    %347 = arith.divf %345, %346 : vector<2x32xf32>
    %348 = vector.extract_strided_slice %335 {offsets = [0, 64], sizes = [2, 32], strides = [1, 1]} : vector<2x128xf32> to vector<2x32xf32>
    %349 = math.tanh %348 : vector<2x32xf32>
    %350 = vector.extract_strided_slice %335 {offsets = [0, 96], sizes = [2, 32], strides = [1, 1]} : vector<2x128xf32> to vector<2x32xf32>
    %351 = arith.negf %350 : vector<2x32xf32>
    %352 = math.exp %351 : vector<2x32xf32>
    %cst_67 = arith.constant 1.000000e+00 : f32
    %353 = vector.broadcast %cst_67 : f32 to vector<2x32xf32>
    %354 = arith.addf %353, %352 : vector<2x32xf32>
    %355 = arith.divf %353, %354 : vector<2x32xf32>
    %356 = arith.mulf %347, %314 : vector<2x32xf32>
    %357 = arith.mulf %341, %349 : vector<2x32xf32>
    %358 = arith.addf %356, %357 : vector<2x32xf32>
    %359 = math.tanh %358 : vector<2x32xf32>
    %360 = arith.mulf %355, %359 : vector<2x32xf32>
    %361 = arith.addf %360, %0 : vector<2x32xf32>
    %c0_68 = arith.constant 0 : index
    %c0_69 = arith.constant 0 : index
    %362 = vector.load %arg7[%c0_68, %c0_69] : memref<2x32xf32, #tpu.memory_space<vmem>>, vector<2x32xf32>
    tpu.vector_store %arg7[%c0_68, %c0_69], %361 {strides = array<i32>} : memref<2x32xf32, #tpu.memory_space<vmem>>, vector<2x32xf32>,
    return
  }
  func.func @transform_0(%arg0: i32) -> (i32, i32) {
    %c0_i32 = arith.constant 0 : i32
    %c0_i32_0 = arith.constant 0 : i32
    return %arg0, %c0_i32 : i32, i32
  }
  func.func @transform_1(%arg0: i32) -> (i32, i32) {
    %c0_i32 = arith.constant 0 : i32
    %c0_i32_0 = arith.constant 0 : i32
    %c0_i32_1 = arith.constant 0 : i32
    return %c0_i32, %c0_i32_0 : i32, i32
  }
  func.func @transform_2(%arg0: i32) -> (i32, i32) {
    %c0_i32 = arith.constant 0 : i32
    %c0_i32_0 = arith.constant 0 : i32
    %c0_i32_1 = arith.constant 0 : i32
    return %c0_i32, %c0_i32_0 : i32, i32
  }
  func.func @transform_3(%arg0: i32) -> (i32, i32) {
    %c0_i32 = arith.constant 0 : i32
    %c0_i32_0 = arith.constant 0 : i32
    %c0_i32_1 = arith.constant 0 : i32
    return %c0_i32, %c0_i32_0 : i32, i32
  }
  func.func @transform_4(%arg0: i32) -> (i32, i32) {
    %c0_i32 = arith.constant 0 : i32
    %c0_i32_0 = arith.constant 0 : i32
    %c0_i32_1 = arith.constant 0 : i32
    return %c0_i32, %c0_i32_0 : i32, i32
  }
  func.func @transform_5(%arg0: i32) -> (i32, i32) {
    %c0_i32 = arith.constant 0 : i32
    %c0_i32_0 = arith.constant 0 : i32
    %c0_i32_1 = arith.constant 0 : i32
    return %c0_i32, %c0_i32_0 : i32, i32
  }
  func.func @transform_6(%arg0: i32) -> (i32, i32) {
    %c0_i32 = arith.constant 0 : i32
    %c0_i32_0 = arith.constant 0 : i32
    return %arg0, %c0_i32 : i32, i32
  }
}

</mosaic_0001>

<bundles_post_ra>
// kernel: tpu_custom_call.1
= control target key start
LH: loop header
LB: loop body
LE: loop exit
PB: predicated region body
PF: predicated region fallthrough
CT: control target
= control target key end

     0   :  { %11 = vsyncpa [#allocation3], 0  ;;  %s3084_s0 = inlined_call_operand.hbm [shape: f32[2,32], index: 0, kind: input, shape index: {}]   ;;  %s3085_s1 = inlined_call_operand.hbm [shape: f32[32,256], index: 1, kind: input, shape index: {}]   ;;  %s3086_s2 = inlined_call_operand.hbm [shape: f32[128,128], index: 2, kind: input, shape index: {}]   ;;  %s3087_s3 = inlined_call_operand.hbm [shape: f32[32,128], index: 3, kind: input, shape index: {}]   ;;  %s3088_s4 = inlined_call_operand.vmem [shape: f32[1,128], index: 4, kind: input, shape index: {}]   ;;  %s3089_s5 = inlined_call_operand.vmem [shape: f32[1,128], index: 5, kind: input, shape index: {}]   ;;  %s3090_s6 = inlined_call_operand.hbm [shape: f32[2,32], index: 6, kind: output, shape index: {}]  }
   0x1   :  { %12 = vsyncpa [#allocation6], 0 }
   0x2   :  { %13 = vsyncpa [#allocation9], 0 }
   0x3   :  { %14 = vsyncpa [#allocation4], 0  ;;  %s2639_s21 = smov [#allocation5]   ;;  %s2521_s25 = scalar_lea.hbm %s3085_s1, 1024 }
   0x4   :  { %s30_s22 = sshll.u32 %s2639_s21, 4  ;;  %p2522_p0 = scmp.ne.s32.totalorder %s3085_s1, %s2521_s25  ;;  %s31_s22 = int_to_ptr.vmem [resolvable:$true] %s30_s22 }
   0x5   :  { %p2525_p1 = scmp.lt.u32.totalorder %s2521_s25, %s3085_s1 }
   0x7   :  { %p2527_p2 = pnand %p2525_p1, %p2522_p0 }
   0x9   :  { %2530 = shalt.err (!%p2527_p2)
}
   0xa   :  { %s2531_s30 = scalar_lea.vmem %s31_s22, 1024  ;;  %p2536_p4 = scmp.lt.s32.totalorder %s31_s22, %s31_s22 }
   0xb   :  { %p2532_p3 = scmp.ne.s32.totalorder %s31_s22, %s2531_s30  ;;  %p2537_p5 = scmp.lt.s32.totalorder %s2531_s30, %s2531_s30 }
   0xd   :  { %p2538_p6 = por %p2537_p5, %p2536_p4 }
   0xf   :  { %p2539_p7 = pnand %p2538_p6, %p2532_p3 }
  0x11   :  { %2542 = shalt.err (!%p2539_p7)
}
  0x12   :  { %s2640_s7 = smov 256   ;;  %s2641_s8 = smov 16  }
  0x13   :  { %36 = dma.hbm_to_vmem [thread:$0]  %s3085_s1, 1024, %s31_s22, [#allocation6], %s2640_s7, %s2640_s7, %s2641_s8  }
  0x14   :  { %s2642_s11 = smov [#allocation2]   ;;  %s2643_s13 = smov [#allocation7]  }
  0x15   :  { %s21_s12 = sshll.u32 %s2642_s11, 4  ;;  %s42_s14 = sshll.u32 %s2643_s13, 4  ;;  %s22_s12 = int_to_ptr.vmem [resolvable:$true] %s21_s12  ;;  %s43_s14 = int_to_ptr.vmem [resolvable:$true] %s42_s14 }
  0x16   :  { %s2543_s17 = scalar_lea.hbm %s3084_s0, 32 }
  0x17   :  { %p2544_p8 = scmp.ne.s32.totalorder %s3084_s0, %s2543_s17  ;;  %p2547_p9 = scmp.lt.u32.totalorder %s2543_s17, %s3084_s0 }
  0x19   :  { %p2549_p10 = pnand %p2547_p9, %p2544_p8 }
  0x1b   :  { %2552 = shalt.err (!%p2549_p10)
}
  0x1c   :  { %s2553_s1 = scalar_lea.vmem %s22_s12, 32  ;;  %p2558_p12 = scmp.lt.s32.totalorder %s22_s12, %s22_s12 }
  0x1d   :  { %p2554_p11 = scmp.ne.s32.totalorder %s22_s12, %s2553_s1  ;;  %p2559_p13 = scmp.lt.s32.totalorder %s2553_s1, %s2553_s1 }
  0x1f   :  { %p2560_p0 = por %p2559_p13, %p2558_p12 }
  0x21   :  { %p2561_p1 = pnand %p2560_p0, %p2554_p11 }
  0x23   :  { %2564 = shalt.err (!%p2561_p1)
}
  0x24   :  { %24 = dma.hbm_to_vmem [thread:$0]  %s3084_s0, 32, %s22_s12, [#allocation3]  }
  0x25   :  { %s2565_s26 = scalar_lea.hbm %s3086_s2, 2048 }
  0x26   :  { %p2566_p2 = scmp.ne.s32.totalorder %s3086_s2, %s2565_s26  ;;  %p2569_p3 = scmp.lt.u32.totalorder %s2565_s26, %s3086_s2 }
  0x28   :  { %p2571_p4 = pnand %p2569_p3, %p2566_p2 }
  0x2a   :  { %2574 = shalt.err (!%p2571_p4)
}
  0x2b   :  { %s2575_s7 = scalar_lea.vmem %s43_s14, 2048  ;;  %p2580_p6 = scmp.lt.s32.totalorder %s43_s14, %s43_s14 }
  0x2c   :  { %p2576_p5 = scmp.ne.s32.totalorder %s43_s14, %s2575_s7  ;;  %p2581_p7 = scmp.lt.s32.totalorder %s2575_s7, %s2575_s7 }
  0x2e   :  { %p2582_p8 = por %p2581_p7, %p2580_p6 }
  0x30   :  { %p2583_p9 = pnand %p2582_p8, %p2576_p5 }
  0x32   :  { %2586 = shalt.err (!%p2583_p9)
}
  0x33   :  { %s2644_s0 = smov 128   ;;  %s2645_s8 = smov 8  }
  0x34   :  { %48 = dma.hbm_to_vmem [thread:$0]  %s3086_s2, 2048, %s43_s14, [#allocation6], %s2644_s0, %s2644_s0, %s2645_s8  }
  0x35   :  { %s2646_s11 = smov [#allocation8]   ;;  %s2587_s16 = scalar_lea.hbm %s3087_s3, 512 }
  0x36   :  { %s54_s12 = sshll.u32 %s2646_s11, 4  ;;  %p2588_p10 = scmp.ne.s32.totalorder %s3087_s3, %s2587_s16  ;;  %s55_s12 = int_to_ptr.vmem [resolvable:$true] %s54_s12 }
  0x37   :  { %p2591_p11 = scmp.lt.u32.totalorder %s2587_s16, %s3087_s3 }
  0x39   :  { %p2593_p12 = pnand %p2591_p11, %p2588_p10 }
  0x3b   :  { %2596 = shalt.err (!%p2593_p12)
}
  0x3c   :  { %s2597_s21 = scalar_lea.vmem %s55_s12, 512  ;;  %p2602_p0 = scmp.lt.s32.totalorder %s55_s12, %s55_s12 }
  0x3d   :  { %p2598_p13 = scmp.ne.s32.totalorder %s55_s12, %s2597_s21  ;;  %p2603_p1 = scmp.lt.s32.totalorder %s2597_s21, %s2597_s21 }
  0x3f   :  { %p2604_p2 = por %p2603_p1, %p2602_p0 }
  0x41   :  { %p2605_p3 = pnand %p2604_p2, %p2598_p13 }
  0x43   :  { %2608 = shalt.err (!%p2605_p3)
}
  0x44   :  { %60 = dma.hbm_to_vmem [thread:$0]  %s3087_s3, 512, %s55_s12, [#allocation9], %s2644_s0, %s2644_s0, %s2645_s8  }
  0x45   :  { %2631 = dma.done.wait [#allocation3], 32  }
  0x46   :  { %2632 = vsyncadd [#allocation3], 4294967264 }
  0x47   :  { %2633 = dma.done.wait [#allocation6], 3072  }
  0x48   :  { %2634 = vsyncadd [#allocation6], 4294964224 }
  0x49   :  { %2635 = dma.done.wait [#allocation9], 512  }
  0x4a   :  { %2636 = vsyncadd [#allocation9], 4294966784  ;;  %v2647_v0 = vmov 0.0   ;;  %v79_v1 = vld [vmem:[#allocation5 + $0x8] sm:$0xff]  ;;  %v81_v2 = vld [vmem:[#allocation5 + $0x18] sm:$0xff]  ;;  %vm114_vm0 = vcmask 261120  }
  0x4b   :  { %252 = vmatprep.mubr.f32.mxu1 %v2647_v0  ;;  %v78_v3 = vld [vmem:[#allocation5] sm:$0xff]  ;;  %v2738_v4 = vpack.c.bf16 %v81_v2, %v79_v1  ;;  %v80_v5 = vld [vmem:[#allocation5 + $0x10] sm:$0xff]  ;;  %v83_v6 = vld [vmem:[#allocation5 + $0x28] sm:$0xff]  ;;  %vm266_vm1 = vcmask 1041408   ;;  %v2648_v22 = vmov 0.0|0.0   ;;  %vm2649_vm2 = vmmov 0  }
  0x4c   :  { %v85_v7 = vld [vmem:[#allocation5 + $0x38] sm:$0xff]  ;;  %v2740_v8 = vpack.c.bf16 %v80_v5, %v78_v3  ;;  %v82_v10 = vld [vmem:[#allocation5 + $0x20] sm:$0xff]  ;;  %v84_v11 = vld [vmem:[#allocation5 + $0x30] sm:$0xff]  ;;  %2147 = vmatprep.subr.bf16.mxu0 %v2648_v22  ;;  %1864 = vmatprep.mubr.msk.f32.mxu0 %vm2649_vm2, %v2647_v0  ;;  %s2650_s24 = smov 64   ;;  %s2652_s25 = smov 96   ;;  %vm1677_vm3 = vcmask 254976  }
  0x4d   :  { %v2742_v9 = vpack.c.bf16 %v85_v7, %v83_v6  ;;  %2154 = vmatprep.subr.bf16.mxu1 %v2738_v4  ;;  %v2746_v12 = vpack.c.bf16 %v84_v11, %v82_v10  ;;  %v2750_v13 = vld [vmem:[#allocation2] sm:$0x3]  ;;  %v103_v19 = vld [vmem:[#allocation8] sm:$0xff]  ;;  %v104_v20 = vld [vmem:[#allocation8 + $0x8] sm:$0xff] }
  0x4e   :  { %2156 = vmatpush1.bf16.msra.mxu1 %v2740_v8  ;;  %v2762_v14 = vld [vmem:[%s3089_s5] ss:$0 sm:$0xff]  ;;  %v105_v21 = vld [vmem:[#allocation8 + $0x10] sm:$0xff]  ;;  %v2148_v23 = vpack.c.bf16 %v104_v20, %v103_v19  ;;  %v86_v26 = vld [vmem:[#allocation7] sm:$0xff] }
  0x4f   :  { %2158 = vmatprep.subr.bf16.mxu1 %v2742_v9  ;;  %v106_v24 = vld [vmem:[#allocation8 + $0x18] sm:$0xff]  ;;  %v87_v27 = vld [vmem:[#allocation7 + $0x8] sm:$0xff]  ;;  %v88_v29 = vld [vmem:[#allocation7 + $0x10] sm:$0xff] }
  0x50   :  { %2149 = vmatpush3.bf16.msra.mxu0 %v2148_v23  ;;  %v2151_v25 = vpack.c.bf16 %v106_v24, %v105_v21  ;;  %v2773_v28 = vpack.c.bf16 %v87_v27, %v86_v26  ;;  %v89_v30 = vld [vmem:[#allocation7 + $0x18] sm:$0xff]  ;;  %v90_v32 = vld [vmem:[#allocation7 + $0x20] sm:$0xff]  ;;  %v91_v33 = vld [vmem:[#allocation7 + $0x28] sm:$0xff] }
  0x51   :  { %2150 = vmatprep.subr.bf16.mxu0 %v2648_v22  ;;  %v2779_v31 = vpack.c.bf16 %v89_v30, %v88_v29  ;;  %v2785_v34 = vpack.c.bf16 %v91_v33, %v90_v32  ;;  %v92_v35 = vld [vmem:[#allocation7 + $0x30] sm:$0xff]  ;;  %v93_v36 = vld [vmem:[#allocation7 + $0x38] sm:$0xff]  ;;  %v94_v38 = vld [vmem:[#allocation7 + $0x40] sm:$0xff] }
  0x52   :  { %2160 = vmatpush1.bf16.msra.mxu1 %v2746_v12  ;;  %v2789_v37 = vpack.c.bf16 %v93_v36, %v92_v35  ;;  %v95_v39 = vld [vmem:[#allocation7 + $0x48] sm:$0xff]  ;;  %v96_v46 = vld [vmem:[#allocation7 + $0x50] sm:$0xff]  ;;  %v97_v47 = vld [vmem:[#allocation7 + $0x58] sm:$0xff] }
  0x53   :  { %2186 = vmatprep.subr.bf16.mxu1 %v2738_v4  ;;  %v2793_v40 = vpack.c.bf16 %v95_v39, %v94_v38  ;;  %v2799_v48 = vpack.c.bf16 %v97_v47, %v96_v46  ;;  %v98_v49 = vld [vmem:[#allocation7 + $0x60] sm:$0xff]  ;;  %v99_v50 = vld [vmem:[#allocation7 + $0x68] sm:$0xff]  ;;  %v100_v52 = vld [vmem:[#allocation7 + $0x70] sm:$0xff] }
  0x54   :  { %2152 = vmatpush3.bf16.msra.mxu0 %v2151_v25  ;;  %v2802_v51 = vpack.c.bf16 %v99_v50, %v98_v49  ;;  %v101_v53 = vld [vmem:[#allocation7 + $0x78] sm:$0xff] }
  0x55   :  { %1698 = vmatmul.mubr.msk.f32.vlgmr.msra.gmra.mrb[0].mxu1 %vm114_vm0, %v2750_v13  ;;  %2161 = vmatprep.subr.bf16.mxu0 %v2648_v22  ;;  %v2806_v54 = vpack.c.bf16 %v101_v53, %v100_v52  ;;  %v1696_v60 = vld [vmem:[%s3088_s4] ss:$0 sm:$0xff]  ;;  %s2651_s4 = smov 32  }
  0x56   :  { %2188 = vmatpush1.bf16.msra.mxu1 %v2740_v8  ;;  %447 = vmatprep.mubr.f32.mxu1 %v2647_v0 }
  0x57   :  { %2190 = vmatprep.subr.bf16.mxu1 %v2742_v9  ;;  %1865 = vmatmul.mubr.msk.f32.vlgmr.msra.gmra.mrb[0].mxu0 %vm114_vm0, %v2750_v13 }
  0x58   :  { %2163 = vmatpush3.bf16.msra.mxu0 %v2773_v28  ;;  %1899 = vmatprep.mubr.msk.f32.mxu0 %vm2649_vm2, %v2647_v0 }
  0x59   :  { %2164 = vmatprep.subr.bf16.mxu0 %v2648_v22 }
  0x5a   :  { %2192 = vmatpush1.bf16.msra.mxu1 %v2746_v12 }
  0x5b   :  { %2193 = vmatprep.subr.bf16.mxu1 %v2648_v22 }
  0x5c   :  { %2166 = vmatpush3.bf16.msra.mxu0 %v2779_v31 }
  0x5d   :  { %2167 = vmatprep.subr.bf16.mxu0 %v2648_v22 }
  0x60   :  { %2169 = vmatpush3.bf16.msra.mxu0 %v2785_v34 }
  0x61   :  { %2170 = vmatprep.subr.bf16.mxu0 %v2648_v22 }
  0x64   :  { %2172 = vmatpush3.bf16.msra.mxu0 %v2789_v37 }
  0x65   :  { %2173 = vmatprep.subr.bf16.mxu0 %v2648_v22 }
  0x68   :  { %2175 = vmatpush3.bf16.msra.mxu0 %v2793_v40 }
  0x69   :  { %2176 = vmatprep.subr.bf16.mxu0 %v2648_v22 }
  0x6c   :  { %2178 = vmatpush3.bf16.msra.mxu0 %v2799_v48 }
  0x6d   :  { %2179 = vmatprep.subr.bf16.mxu0 %v2648_v22 }
  0x70   :  { %2181 = vmatpush3.bf16.msra.mxu0 %v2802_v51 }
  0x71   :  { %2182 = vmatprep.subr.bf16.mxu0 %v2648_v22 }
  0x74   :  { %2184 = vmatpush3.bf16.msra.mxu0 %v2806_v54 }
  0x75   :  { %2218 = vmatprep.subr.bf16.mxu0 %v2738_v4 }
 0x128   :  { %v254_v15 = vpop.f32.mrb[0].mxu1 }
 0x129   :  { %v265_v16 = vadd.f32 %v2762_v14, %v254_v15  ;;  %v2765_v17 = vpop.f32.mrb[1].mxu1 }
 0x12a   :  { %v184_v55 = vpop.f32.mrb[0].mxu0 }
 0x12b   :  { %v267_v18 = vsel %vm266_vm1, %v265_v16, -inf  ;;  %v1866_v56 = vpop.f32.mrb[1].mxu0  ;;  %v2819_v61 = vadd.f32 %v1696_v60, %v184_v55 }
 0x12c   :  { %268 = vmax.xlane.f32.xlu0 %v267_v18 }
 0x1b9   :  { %v269_v41 = vpop.xlane.xlu0 %268 }
 0x1ba   :  { %v270_v42 = vsub.f32 %v265_v16, %v269_v41 }
 0x1bc   :  { %v271_v43 = vmul.f32 1.442695, %v270_v42 }
 0x1be   :  { %2424 = vpow2.f32 %v271_v43 }
 0x1c8   :  { %v2425_v44 = vpop.eup %2424 }
 0x1c9   :  { %v273_v45 = vsel %vm266_vm1, %v2425_v44, 0.0 }
 0x1ca   :  { %274 = vadd.xlane.f32.xlu0 %v273_v45 }
 0x257   :  { %v275_v57 = vpop.xlane.xlu0 %274 }
 0x258   :  { %2426 = vrcp.f32 %v275_v57 }
 0x262   :  { %v2427_v58 = vpop.eup %2426 }
 0x263   :  { %v277_v59 = vmul.f32 %v2427_v58, %v2425_v44 }
 0x265   :  { %1900 = vmatmul.mubr.f32.vlgmr.msra.gmra.mrb[2].mxu0 %v277_v59 }
 0x266   :  { %2220 = vmatpush1.bf16.msra.mxu0 %v2740_v8  ;;  %632 = vmatprep.mubr.f32.mxu0 %v2647_v0 }
 0x267   :  { %2222 = vmatprep.subr.bf16.mxu0 %v2742_v9 }
 0x26a   :  { %2224 = vmatpush1.bf16.msra.mxu0 %v2746_v12 }
 0x26b   :  { %2225 = vmatprep.subr.bf16.mxu0 %v2648_v22 }
 0x338   :  { %v344_v62 = vpop.f32.mrb[2].mxu0 }
 0x339   :  { %v348_v63 = vadd.f32 %v344_v62, %v2819_v61  ;;  %v1901_v1 = vpop.f32.mrb[3].mxu0 }
 0x33b   :  { %v349_v2 = vadd.f32 %v348_v63, %v2765_v17 }
 0x33d   :  { %2428 = vtanh.f32 %v349_v2  ;;  %v1700_v5 = vmul.f32 -1.442695, %v349_v2 }
 0x33f   :  { %2430 = vpow2.f32 %v1700_v5 }
 0x347   :  { %v2429_v3 = vpop.eup %2428 }
 0x348   :  { %359 = vrot.lane.b32.xlu1 %v2429_v3, %s2650_s24 }
 0x349   :  { %v2431_v6 = vpop.eup %2430 }
 0x34a   :  { %v353_v7 = vadd.f32 1.0, %v2431_v6 }
 0x34c   :  { %2432 = vrcp.f32 %v353_v7 }
 0x356   :  { %v2433_v10 = vpop.eup %2432 }
 0x357   :  { %v357_v16 = vmul.f32 0.0, %v2433_v10 }
 0x3ba   :  { %v360_v11 = vpop.permute.xlu1 %359 }
 0x3bb   :  { %v362_v15 = vmul.f32 %v2433_v10, %v360_v11 }
 0x3bd   :  { %364 = vrot.lane.b32.xlu1 %v362_v15, %s2651_s4 }
 0x3c1   :  { %374 = vrot.lane.b32.xlu1 %v2750_v13, %s2652_s25 }
 0x42f   :  { %v365_v17 = vpop.permute.xlu1 %364 }
 0x430   :  { %v2826_v18 = vadd.f32 %v365_v17, %v357_v16 }
 0x432   :  { %2434 = vtanh.f32 %v2826_v18 }
 0x433   :  { %v2830_v21 = vpop.permute.xlu1 %374 }
 0x43c   :  { %v2435_v19 = vpop.eup %2434 }
 0x43d   :  { %370 = vrot.lane.b32.xlu0 %v2435_v19, %s2650_s24 }
 0x4af   :  { %v371_v20 = vpop.permute.xlu0 %370 }
 0x4b0   :  { %v373_v23 = vmul.f32 %v2433_v10, %v371_v20 }
 0x4b2   :  { %v377_v24 = vadd.f32 %v2830_v21, %v373_v23 }
 0x4b4   :  { %379 = vrot.lane.b32.xlu1 %v377_v24, %s2651_s4 }
 0x526   :  { %v380_v25 = vpop.permute.xlu1 %379 }
 0x527   :  { %1701 = vmatmul.mubr.msk.f32.vlgmr.msra.gmra.mrb[2].mxu1 %vm114_vm0, %v380_v25 }
 0x528   :  { %2195 = vmatpush3.bf16.msra.mxu1 %v2773_v28  ;;  %1934 = vmatprep.mubr.msk.f32.mxu1 %vm2649_vm2, %v2647_v0 }
 0x529   :  { %2196 = vmatprep.subr.bf16.mxu1 %v2648_v22 }
 0x52c   :  { %2198 = vmatpush3.bf16.msra.mxu1 %v2779_v31 }
 0x52d   :  { %2199 = vmatprep.subr.bf16.mxu1 %v2648_v22 }
 0x530   :  { %2201 = vmatpush3.bf16.msra.mxu1 %v2785_v34 }
 0x531   :  { %2202 = vmatprep.subr.bf16.mxu1 %v2648_v22 }
 0x534   :  { %2204 = vmatpush3.bf16.msra.mxu1 %v2789_v37 }
 0x535   :  { %2205 = vmatprep.subr.bf16.mxu1 %v2648_v22 }
 0x538   :  { %2207 = vmatpush3.bf16.msra.mxu1 %v2793_v40 }
 0x539   :  { %2208 = vmatprep.subr.bf16.mxu1 %v2648_v22 }
 0x53c   :  { %2210 = vmatpush3.bf16.msra.mxu1 %v2799_v48 }
 0x53d   :  { %2211 = vmatprep.subr.bf16.mxu1 %v2648_v22 }
 0x540   :  { %2213 = vmatpush3.bf16.msra.mxu1 %v2802_v51 }
 0x541   :  { %2214 = vmatprep.subr.bf16.mxu1 %v2648_v22 }
 0x544   :  { %2216 = vmatpush3.bf16.msra.mxu1 %v2806_v54 }
 0x545   :  { %2250 = vmatprep.subr.bf16.mxu1 %v2738_v4 }
 0x5fa   :  { %v449_v13 = vpop.f32.mrb[2].mxu1 }
 0x5fb   :  { %v454_v26 = vadd.f32 %v2762_v14, %v449_v13  ;;  %v451_v27 = vpop.f32.mrb[3].mxu1 }
 0x5fd   :  { %v455_v29 = vsel %vm266_vm1, %v454_v26, -inf }
 0x5fe   :  { %456 = vmax.xlane.f32.xlu1 %v455_v29 }
 0x68b   :  { %v457_v30 = vpop.xlane.xlu1 %456 }
 0x68c   :  { %v458_v32 = vsub.f32 %v454_v26, %v457_v30 }
 0x68e   :  { %v459_v33 = vmul.f32 1.442695, %v458_v32 }
 0x690   :  { %2436 = vpow2.f32 %v459_v33 }
 0x69a   :  { %v2437_v35 = vpop.eup %2436 }
 0x69b   :  { %v461_v36 = vsel %vm266_vm1, %v2437_v35, 0.0 }
 0x69c   :  { %462 = vadd.xlane.f32.xlu0 %v461_v36 }
 0x729   :  { %v463_v38 = vpop.xlane.xlu0 %462 }
 0x72a   :  { %2438 = vrcp.f32 %v463_v38 }
 0x734   :  { %v2439_v39 = vpop.eup %2438 }
 0x735   :  { %v465_v41 = vmul.f32 %v2439_v39, %v2437_v35 }
 0x737   :  { %1935 = vmatmul.mubr.f32.vlgmr.msra.gmra.mrb[4].mxu1 %v465_v41 }
 0x738   :  { %2252 = vmatpush1.bf16.msra.mxu1 %v2740_v8  ;;  %817 = vmatprep.mubr.f32.mxu1 %v2647_v0 }
 0x739   :  { %2254 = vmatprep.subr.bf16.mxu1 %v2742_v9 }
 0x73c   :  { %2256 = vmatpush1.bf16.msra.mxu1 %v2746_v12 }
 0x73d   :  { %2257 = vmatprep.subr.bf16.mxu1 %v2648_v22 }
 0x80a   :  { %v532_v42 = vpop.f32.mrb[4].mxu1 }
 0x80b   :  { %v536_v43 = vadd.f32 %v532_v42, %v2819_v61  ;;  %v1936_v44 = vpop.f32.mrb[5].mxu1 }
 0x80d   :  { %v537_v45 = vadd.f32 %v536_v43, %v451_v27 }
 0x80f   :  { %2440 = vtanh.f32 %v537_v45  ;;  %v1702_v47 = vmul.f32 -1.442695, %v537_v45 }
 0x811   :  { %2442 = vpow2.f32 %v1702_v47 }
 0x819   :  { %v2441_v46 = vpop.eup %2440 }
 0x81a   :  { %547 = vrot.lane.b32.xlu1 %v2441_v46, %s2650_s24 }
 0x81b   :  { %v2443_v49 = vpop.eup %2442 }
 0x81c   :  { %v541_v50 = vadd.f32 1.0, %v2443_v49 }
 0x81e   :  { %2444 = vrcp.f32 %v541_v50 }
 0x828   :  { %v2445_v52 = vpop.eup %2444 }
 0x829   :  { %v545_v56 = vmul.f32 %v2445_v52, %v2826_v18 }
 0x88c   :  { %v548_v53 = vpop.permute.xlu1 %547 }
 0x88d   :  { %v550_v55 = vmul.f32 %v2445_v52, %v548_v53 }
 0x88f   :  { %552 = vrot.lane.b32.xlu0 %v550_v55, %s2651_s4 }
 0x901   :  { %v553_v57 = vpop.permute.xlu0 %552 }
 0x902   :  { %v2865_v58 = vadd.f32 %v553_v57, %v545_v56 }
 0x904   :  { %2446 = vtanh.f32 %v2865_v58 }
 0x90e   :  { %v2447_v59 = vpop.eup %2446 }
 0x90f   :  { %558 = vrot.lane.b32.xlu1 %v2447_v59, %s2650_s24 }
 0x981   :  { %v559_v60 = vpop.permute.xlu1 %558 }
 0x982   :  { %v561_v62 = vmul.f32 %v2445_v52, %v559_v60 }
 0x984   :  { %v562_v63 = vadd.f32 %v561_v62, %v2830_v21 }
 0x986   :  { %564 = vrot.lane.b32.xlu1 %v562_v63, %s2651_s4 }
 0x9f8   :  { %v565_v1 = vpop.permute.xlu1 %564 }
 0x9f9   :  { %1703 = vmatmul.mubr.msk.f32.vlgmr.msra.gmra.mrb[4].mxu0 %vm114_vm0, %v565_v1 }
 0x9fa   :  { %2227 = vmatpush3.bf16.msra.mxu0 %v2773_v28  ;;  %1969 = vmatprep.mubr.msk.f32.mxu0 %vm2649_vm2, %v2647_v0 }
 0x9fb   :  { %2228 = vmatprep.subr.bf16.mxu0 %v2648_v22 }
 0x9fe   :  { %2230 = vmatpush3.bf16.msra.mxu0 %v2779_v31 }
 0x9ff   :  { %2231 = vmatprep.subr.bf16.mxu0 %v2648_v22 }
 0xa02   :  { %2233 = vmatpush3.bf16.msra.mxu0 %v2785_v34 }
 0xa03   :  { %2234 = vmatprep.subr.bf16.mxu0 %v2648_v22 }
 0xa06   :  { %2236 = vmatpush3.bf16.msra.mxu0 %v2789_v37 }
 0xa07   :  { %2237 = vmatprep.subr.bf16.mxu0 %v2648_v22 }
 0xa0a   :  { %2239 = vmatpush3.bf16.msra.mxu0 %v2793_v40 }
 0xa0b   :  { %2240 = vmatprep.subr.bf16.mxu0 %v2648_v22 }
 0xa0e   :  { %2242 = vmatpush3.bf16.msra.mxu0 %v2799_v48 }
 0xa0f   :  { %2243 = vmatprep.subr.bf16.mxu0 %v2648_v22 }
 0xa12   :  { %2245 = vmatpush3.bf16.msra.mxu0 %v2802_v51 }
 0xa13   :  { %2246 = vmatprep.subr.bf16.mxu0 %v2648_v22 }
 0xa16   :  { %2248 = vmatpush3.bf16.msra.mxu0 %v2806_v54 }
 0xa17   :  { %2282 = vmatprep.subr.bf16.mxu0 %v2738_v4 }
 0xacc   :  { %v634_v2 = vpop.f32.mrb[4].mxu0 }
 0xacd   :  { %v639_v3 = vadd.f32 %v2762_v14, %v634_v2  ;;  %v636_v5 = vpop.f32.mrb[5].mxu0 }
 0xacf   :  { %v640_v6 = vsel %vm266_vm1, %v639_v3, -inf }
 0xad0   :  { %641 = vmax.xlane.f32.xlu1 %v640_v6 }
 0xb5d   :  { %v642_v7 = vpop.xlane.xlu1 %641 }
 0xb5e   :  { %v643_v10 = vsub.f32 %v639_v3, %v642_v7 }
 0xb60   :  { %v644_v11 = vmul.f32 1.442695, %v643_v10 }
 0xb62   :  { %2448 = vpow2.f32 %v644_v11 }
 0xb6c   :  { %v2449_v15 = vpop.eup %2448 }
 0xb6d   :  { %v646_v16 = vsel %vm266_vm1, %v2449_v15, 0.0 }
 0xb6e   :  { %647 = vadd.xlane.f32.xlu0 %v646_v16 }
 0xbfb   :  { %v648_v17 = vpop.xlane.xlu0 %647 }
 0xbfc   :  { %2450 = vrcp.f32 %v648_v17 }
 0xc06   :  { %v2451_v18 = vpop.eup %2450 }
 0xc07   :  { %v650_v19 = vmul.f32 %v2451_v18, %v2449_v15 }
 0xc09   :  { %1970 = vmatmul.mubr.f32.vlgmr.msra.gmra.mrb[6].mxu0 %v650_v19 }
 0xc0a   :  { %2284 = vmatpush1.bf16.msra.mxu0 %v2740_v8  ;;  %1002 = vmatprep.mubr.f32.mxu0 %v2647_v0 }
 0xc0b   :  { %2286 = vmatprep.subr.bf16.mxu0 %v2742_v9 }
 0xc0e   :  { %2288 = vmatpush1.bf16.msra.mxu0 %v2746_v12 }
 0xc0f   :  { %2289 = vmatprep.subr.bf16.mxu0 %v2648_v22 }
 0xcdc   :  { %v717_v20 = vpop.f32.mrb[6].mxu0 }
 0xcdd   :  { %v721_v23 = vadd.f32 %v717_v20, %v2819_v61  ;;  %v1971_v24 = vpop.f32.mrb[7].mxu0 }
 0xcdf   :  { %v722_v25 = vadd.f32 %v721_v23, %v636_v5 }
 0xce1   :  { %2452 = vtanh.f32 %v722_v25  ;;  %v1704_v26 = vmul.f32 -1.442695, %v722_v25 }
 0xce3   :  { %2454 = vpow2.f32 %v1704_v26 }
 0xceb   :  { %v2453_v13 = vpop.eup %2452 }
 0xcec   :  { %732 = vrot.lane.b32.xlu1 %v2453_v13, %s2650_s24 }
 0xced   :  { %v2455_v27 = vpop.eup %2454 }
 0xcee   :  { %v726_v29 = vadd.f32 1.0, %v2455_v27 }
 0xcf0   :  { %2456 = vrcp.f32 %v726_v29 }
 0xcfa   :  { %v2457_v30 = vpop.eup %2456 }
 0xcfb   :  { %v730_v35 = vmul.f32 %v2457_v30, %v2865_v58 }
 0xd5e   :  { %v733_v32 = vpop.permute.xlu1 %732 }
 0xd5f   :  { %v735_v33 = vmul.f32 %v2457_v30, %v733_v32 }
 0xd61   :  { %737 = vrot.lane.b32.xlu0 %v735_v33, %s2651_s4 }
 0xdd3   :  { %v738_v36 = vpop.permute.xlu0 %737 }
 0xdd4   :  { %v2902_v38 = vadd.f32 %v738_v36, %v730_v35 }
 0xdd6   :  { %2458 = vtanh.f32 %v2902_v38 }
 0xde0   :  { %v2459_v39 = vpop.eup %2458 }
 0xde1   :  { %743 = vrot.lane.b32.xlu1 %v2459_v39, %s2650_s24 }
 0xe53   :  { %v744_v41 = vpop.permute.xlu1 %743 }
 0xe54   :  { %v746_v42 = vmul.f32 %v2457_v30, %v744_v41 }
 0xe56   :  { %v747_v43 = vadd.f32 %v746_v42, %v2830_v21 }
 0xe58   :  { %749 = vrot.lane.b32.xlu1 %v747_v43, %s2651_s4 }
 0xeca   :  { %v750_v44 = vpop.permute.xlu1 %749 }
 0xecb   :  { %1705 = vmatmul.mubr.msk.f32.vlgmr.msra.gmra.mrb[6].mxu1 %vm114_vm0, %v750_v44 }
 0xecc   :  { %2259 = vmatpush3.bf16.msra.mxu1 %v2773_v28  ;;  %2004 = vmatprep.mubr.msk.f32.mxu1 %vm2649_vm2, %v2647_v0 }
 0xecd   :  { %2260 = vmatprep.subr.bf16.mxu1 %v2648_v22 }
 0xed0   :  { %2262 = vmatpush3.bf16.msra.mxu1 %v2779_v31 }
 0xed1   :  { %2263 = vmatprep.subr.bf16.mxu1 %v2648_v22 }
 0xed4   :  { %2265 = vmatpush3.bf16.msra.mxu1 %v2785_v34 }
 0xed5   :  { %2266 = vmatprep.subr.bf16.mxu1 %v2648_v22 }
 0xed8   :  { %2268 = vmatpush3.bf16.msra.mxu1 %v2789_v37 }
 0xed9   :  { %2269 = vmatprep.subr.bf16.mxu1 %v2648_v22 }
 0xedc   :  { %2271 = vmatpush3.bf16.msra.mxu1 %v2793_v40 }
 0xedd   :  { %2272 = vmatprep.subr.bf16.mxu1 %v2648_v22 }
 0xee0   :  { %2274 = vmatpush3.bf16.msra.mxu1 %v2799_v48 }
 0xee1   :  { %2275 = vmatprep.subr.bf16.mxu1 %v2648_v22 }
 0xee4   :  { %2277 = vmatpush3.bf16.msra.mxu1 %v2802_v51 }
 0xee5   :  { %2278 = vmatprep.subr.bf16.mxu1 %v2648_v22 }
 0xee8   :  { %2280 = vmatpush3.bf16.msra.mxu1 %v2806_v54 }
 0xee9   :  { %2314 = vmatprep.subr.bf16.mxu1 %v2738_v4 }
 0xf9e   :  { %v819_v45 = vpop.f32.mrb[6].mxu1 }
 0xf9f   :  { %v824_v46 = vadd.f32 %v2762_v14, %v819_v45  ;;  %v821_v47 = vpop.f32.mrb[7].mxu1 }
 0xfa1   :  { %v825_v49 = vsel %vm266_vm1, %v824_v46, -inf }
 0xfa2   :  { %826 = vmax.xlane.f32.xlu0 %v825_v49 }
0x102f   :  { %v827_v50 = vpop.xlane.xlu0 %826 }
0x1030   :  { %v828_v52 = vsub.f32 %v824_v46, %v827_v50 }
0x1032   :  { %v829_v53 = vmul.f32 1.442695, %v828_v52 }
0x1034   :  { %2460 = vpow2.f32 %v829_v53 }
0x103e   :  { %v2461_v55 = vpop.eup %2460 }
0x103f   :  { %v831_v56 = vsel %vm266_vm1, %v2461_v55, 0.0 }
0x1040   :  { %832 = vadd.xlane.f32.xlu1 %v831_v56 }
0x10cd   :  { %v833_v57 = vpop.xlane.xlu1 %832 }
0x10ce   :  { %2462 = vrcp.f32 %v833_v57 }
0x10d8   :  { %v2463_v58 = vpop.eup %2462 }
0x10d9   :  { %v835_v59 = vmul.f32 %v2463_v58, %v2461_v55 }
0x10db   :  { %2005 = vmatmul.mubr.f32.vlgmr.msra.gmra.mrb[8].mxu1 %v835_v59 }
0x10dc   :  { %2316 = vmatpush1.bf16.msra.mxu1 %v2740_v8  ;;  %1187 = vmatprep.mubr.f32.mxu1 %v2647_v0 }
0x10dd   :  { %2318 = vmatprep.subr.bf16.mxu1 %v2742_v9 }
0x10e0   :  { %2320 = vmatpush1.bf16.msra.mxu1 %v2746_v12 }
0x10e1   :  { %2321 = vmatprep.subr.bf16.mxu1 %v2648_v22 }
0x11ae   :  { %v902_v60 = vpop.f32.mrb[8].mxu1 }
0x11af   :  { %v906_v62 = vadd.f32 %v902_v60, %v2819_v61  ;;  %v2006_v63 = vpop.f32.mrb[9].mxu1 }
0x11b1   :  { %v907_v1 = vadd.f32 %v906_v62, %v821_v47 }
0x11b3   :  { %2464 = vtanh.f32 %v907_v1  ;;  %v1706_v3 = vmul.f32 -1.442695, %v907_v1 }
0x11b5   :  { %2466 = vpow2.f32 %v1706_v3 }
0x11bd   :  { %v2465_v2 = vpop.eup %2464 }
0x11be   :  { %917 = vrot.lane.b32.xlu0 %v2465_v2, %s2650_s24 }
0x11bf   :  { %v2467_v5 = vpop.eup %2466 }
0x11c0   :  { %v911_v6 = vadd.f32 1.0, %v2467_v5 }
0x11c2   :  { %2468 = vrcp.f32 %v911_v6 }
0x11cc   :  { %v2469_v7 = vpop.eup %2468 }
0x11cd   :  { %v915_v15 = vmul.f32 %v2469_v7, %v2902_v38 }
0x1230   :  { %v918_v10 = vpop.permute.xlu0 %917 }
0x1231   :  { %v920_v11 = vmul.f32 %v2469_v7, %v918_v10 }
0x1233   :  { %922 = vrot.lane.b32.xlu1 %v920_v11, %s2651_s4 }
0x12a5   :  { %v923_v16 = vpop.permute.xlu1 %922 }
0x12a6   :  { %v2939_v17 = vadd.f32 %v923_v16, %v915_v15 }
0x12a8   :  { %2470 = vtanh.f32 %v2939_v17 }
0x12b2   :  { %v2471_v18 = vpop.eup %2470 }
0x12b3   :  { %928 = vrot.lane.b32.xlu0 %v2471_v18, %s2650_s24 }
0x1325   :  { %v929_v19 = vpop.permute.xlu0 %928 }
0x1326   :  { %v931_v20 = vmul.f32 %v2469_v7, %v929_v19 }
0x1328   :  { %v932_v23 = vadd.f32 %v931_v20, %v2830_v21 }
0x132a   :  { %934 = vrot.lane.b32.xlu1 %v932_v23, %s2651_s4 }
0x139c   :  { %v935_v24 = vpop.permute.xlu1 %934 }
0x139d   :  { %1707 = vmatmul.mubr.msk.f32.vlgmr.msra.gmra.mrb[8].mxu0 %vm114_vm0, %v935_v24 }
0x139e   :  { %2291 = vmatpush3.bf16.msra.mxu0 %v2773_v28  ;;  %2039 = vmatprep.mubr.msk.f32.mxu0 %vm2649_vm2, %v2647_v0 }
0x139f   :  { %2292 = vmatprep.subr.bf16.mxu0 %v2648_v22 }
0x13a2   :  { %2294 = vmatpush3.bf16.msra.mxu0 %v2779_v31 }
0x13a3   :  { %2295 = vmatprep.subr.bf16.mxu0 %v2648_v22 }
0x13a6   :  { %2297 = vmatpush3.bf16.msra.mxu0 %v2785_v34 }
0x13a7   :  { %2298 = vmatprep.subr.bf16.mxu0 %v2648_v22 }
0x13aa   :  { %2300 = vmatpush3.bf16.msra.mxu0 %v2789_v37 }
0x13ab   :  { %2301 = vmatprep.subr.bf16.mxu0 %v2648_v22 }
0x13ae   :  { %2303 = vmatpush3.bf16.msra.mxu0 %v2793_v40 }
0x13af   :  { %2304 = vmatprep.subr.bf16.mxu0 %v2648_v22 }
0x13b2   :  { %2306 = vmatpush3.bf16.msra.mxu0 %v2799_v48 }
0x13b3   :  { %2307 = vmatprep.subr.bf16.mxu0 %v2648_v22 }
0x13b6   :  { %2309 = vmatpush3.bf16.msra.mxu0 %v2802_v51 }
0x13b7   :  { %2310 = vmatprep.subr.bf16.mxu0 %v2648_v22 }
0x13ba   :  { %2312 = vmatpush3.bf16.msra.mxu0 %v2806_v54 }
0x13bb   :  { %2346 = vmatprep.subr.bf16.mxu0 %v2738_v4 }
0x1470   :  { %v1004_v25 = vpop.f32.mrb[8].mxu0 }
0x1471   :  { %v1009_v13 = vadd.f32 %v2762_v14, %v1004_v25  ;;  %v1006_v26 = vpop.f32.mrb[9].mxu0 }
0x1473   :  { %v1010_v27 = vsel %vm266_vm1, %v1009_v13, -inf }
0x1474   :  { %1011 = vmax.xlane.f32.xlu0 %v1010_v27 }
0x1501   :  { %v1012_v29 = vpop.xlane.xlu0 %1011 }
0x1502   :  { %v1013_v30 = vsub.f32 %v1009_v13, %v1012_v29 }
0x1504   :  { %v1014_v32 = vmul.f32 1.442695, %v1013_v30 }
0x1506   :  { %2472 = vpow2.f32 %v1014_v32 }
0x1510   :  { %v2473_v33 = vpop.eup %2472 }
0x1511   :  { %v1016_v35 = vsel %vm266_vm1, %v2473_v33, 0.0 }
0x1512   :  { %1017 = vadd.xlane.f32.xlu1 %v1016_v35 }
0x159f   :  { %v1018_v36 = vpop.xlane.xlu1 %1017 }
0x15a0   :  { %2474 = vrcp.f32 %v1018_v36 }
0x15aa   :  { %v2475_v38 = vpop.eup %2474 }
0x15ab   :  { %v1020_v39 = vmul.f32 %v2475_v38, %v2473_v33 }
0x15ad   :  { %2040 = vmatmul.mubr.f32.vlgmr.msra.gmra.mrb[10].mxu0 %v1020_v39 }
0x15ae   :  { %2348 = vmatpush1.bf16.msra.mxu0 %v2740_v8  ;;  %1372 = vmatprep.mubr.f32.mxu0 %v2647_v0 }
0x15af   :  { %2350 = vmatprep.subr.bf16.mxu0 %v2742_v9 }
0x15b2   :  { %2352 = vmatpush1.bf16.msra.mxu0 %v2746_v12 }
0x15b3   :  { %2353 = vmatprep.subr.bf16.mxu0 %v2648_v22 }
0x1680   :  { %v1087_v41 = vpop.f32.mrb[10].mxu0 }
0x1681   :  { %v1091_v42 = vadd.f32 %v1087_v41, %v2819_v61  ;;  %v2041_v43 = vpop.f32.mrb[11].mxu0 }
0x1683   :  { %v1092_v44 = vadd.f32 %v1091_v42, %v1006_v26 }
0x1685   :  { %2476 = vtanh.f32 %v1092_v44  ;;  %v1708_v46 = vmul.f32 -1.442695, %v1092_v44 }
0x1687   :  { %2478 = vpow2.f32 %v1708_v46 }
0x168f   :  { %v2477_v45 = vpop.eup %2476 }
0x1690   :  { %1102 = vrot.lane.b32.xlu0 %v2477_v45, %s2650_s24 }
0x1691   :  { %v2479_v47 = vpop.eup %2478 }
0x1692   :  { %v1096_v49 = vadd.f32 1.0, %v2479_v47 }
0x1694   :  { %2480 = vrcp.f32 %v1096_v49 }
0x169e   :  { %v2481_v50 = vpop.eup %2480 }
0x169f   :  { %v1100_v55 = vmul.f32 %v2481_v50, %v2939_v17 }
0x1702   :  { %v1103_v52 = vpop.permute.xlu0 %1102 }
0x1703   :  { %v1105_v53 = vmul.f32 %v2481_v50, %v1103_v52 }
0x1705   :  { %1107 = vrot.lane.b32.xlu1 %v1105_v53, %s2651_s4 }
0x1777   :  { %v1108_v56 = vpop.permute.xlu1 %1107 }
0x1778   :  { %v2976_v57 = vadd.f32 %v1108_v56, %v1100_v55 }
0x177a   :  { %2482 = vtanh.f32 %v2976_v57 }
0x1784   :  { %v2483_v58 = vpop.eup %2482 }
0x1785   :  { %1113 = vrot.lane.b32.xlu0 %v2483_v58, %s2650_s24 }
0x17f7   :  { %v1114_v59 = vpop.permute.xlu0 %1113 }
0x17f8   :  { %v1116_v60 = vmul.f32 %v2481_v50, %v1114_v59 }
0x17fa   :  { %v1117_v62 = vadd.f32 %v1116_v60, %v2830_v21 }
0x17fc   :  { %1119 = vrot.lane.b32.xlu1 %v1117_v62, %s2651_s4 }
0x186e   :  { %v1120_v63 = vpop.permute.xlu1 %1119 }
0x186f   :  { %1709 = vmatmul.mubr.msk.f32.vlgmr.msra.gmra.mrb[10].mxu1 %vm114_vm0, %v1120_v63 }
0x1870   :  { %2323 = vmatpush3.bf16.msra.mxu1 %v2773_v28  ;;  %2074 = vmatprep.mubr.msk.f32.mxu1 %vm2649_vm2, %v2647_v0 }
0x1871   :  { %2324 = vmatprep.subr.bf16.mxu1 %v2648_v22 }
0x1874   :  { %2326 = vmatpush3.bf16.msra.mxu1 %v2779_v31 }
0x1875   :  { %2327 = vmatprep.subr.bf16.mxu1 %v2648_v22 }
0x1878   :  { %2329 = vmatpush3.bf16.msra.mxu1 %v2785_v34 }
0x1879   :  { %2330 = vmatprep.subr.bf16.mxu1 %v2648_v22 }
0x187c   :  { %2332 = vmatpush3.bf16.msra.mxu1 %v2789_v37 }
0x187d   :  { %2333 = vmatprep.subr.bf16.mxu1 %v2648_v22 }
0x1880   :  { %2335 = vmatpush3.bf16.msra.mxu1 %v2793_v40 }
0x1881   :  { %2336 = vmatprep.subr.bf16.mxu1 %v2648_v22 }
0x1884   :  { %2338 = vmatpush3.bf16.msra.mxu1 %v2799_v48 }
0x1885   :  { %2339 = vmatprep.subr.bf16.mxu1 %v2648_v22 }
0x1888   :  { %2341 = vmatpush3.bf16.msra.mxu1 %v2802_v51 }
0x1889   :  { %2342 = vmatprep.subr.bf16.mxu1 %v2648_v22 }
0x188c   :  { %2344 = vmatpush3.bf16.msra.mxu1 %v2806_v54 }
0x188d   :  { %2378 = vmatprep.subr.bf16.mxu1 %v2738_v4 }
0x1942   :  { %v1189_v1 = vpop.f32.mrb[10].mxu1 }
0x1943   :  { %v1194_v2 = vadd.f32 %v2762_v14, %v1189_v1  ;;  %v1191_v3 = vpop.f32.mrb[11].mxu1 }
0x1945   :  { %v1195_v5 = vsel %vm266_vm1, %v1194_v2, -inf }
0x1946   :  { %1196 = vmax.xlane.f32.xlu0 %v1195_v5 }
0x19d3   :  { %v1197_v6 = vpop.xlane.xlu0 %1196 }
0x19d4   :  { %v1198_v7 = vsub.f32 %v1194_v2, %v1197_v6 }
0x19d6   :  { %v1199_v10 = vmul.f32 1.442695, %v1198_v7 }
0x19d8   :  { %2484 = vpow2.f32 %v1199_v10 }
0x19e2   :  { %v2485_v11 = vpop.eup %2484 }
0x19e3   :  { %v1201_v15 = vsel %vm266_vm1, %v2485_v11, 0.0 }
0x19e4   :  { %1202 = vadd.xlane.f32.xlu1 %v1201_v15 }
0x1a71   :  { %v1203_v16 = vpop.xlane.xlu1 %1202 }
0x1a72   :  { %2486 = vrcp.f32 %v1203_v16 }
0x1a7c   :  { %v2487_v17 = vpop.eup %2486 }
0x1a7d   :  { %v1205_v18 = vmul.f32 %v2487_v17, %v2485_v11 }
0x1a7f   :  { %2075 = vmatmul.mubr.f32.vlgmr.msra.gmra.mrb[12].mxu1 %v1205_v18 }
0x1a80   :  { %2380 = vmatpush1.bf16.msra.mxu1 %v2740_v8  ;;  %1557 = vmatprep.mubr.f32.mxu1 %v2647_v0 }
0x1a81   :  { %2382 = vmatprep.subr.bf16.mxu1 %v2742_v9 }
0x1a84   :  { %2384 = vmatpush1.bf16.msra.mxu1 %v2746_v12 }
0x1a85   :  { %2385 = vmatprep.subr.bf16.mxu1 %v2648_v22 }
0x1b52   :  { %v1272_v4 = vpop.f32.mrb[12].mxu1 }
0x1b53   :  { %v1276_v19 = vadd.f32 %v1272_v4, %v2819_v61  ;;  %v2076_v20 = vpop.f32.mrb[13].mxu1 }
0x1b55   :  { %v1277_v23 = vadd.f32 %v1276_v19, %v1191_v3 }
0x1b57   :  { %2488 = vtanh.f32 %v1277_v23  ;;  %v1710_v25 = vmul.f32 -1.442695, %v1277_v23 }
0x1b59   :  { %2490 = vpow2.f32 %v1710_v25 }
0x1b61   :  { %v2489_v24 = vpop.eup %2488 }
0x1b62   :  { %1287 = vrot.lane.b32.xlu0 %v2489_v24, %s2650_s24 }
0x1b63   :  { %v2491_v8 = vpop.eup %2490 }
0x1b64   :  { %v1281_v13 = vadd.f32 1.0, %v2491_v8 }
0x1b66   :  { %2492 = vrcp.f32 %v1281_v13 }
0x1b70   :  { %v2493_v26 = vpop.eup %2492 }
0x1b71   :  { %v1285_v12 = vmul.f32 %v2493_v26, %v2976_v57 }
0x1bd4   :  { %v1288_v9 = vpop.permute.xlu0 %1287 }
0x1bd5   :  { %v1290_v27 = vmul.f32 %v2493_v26, %v1288_v9 }
0x1bd7   :  { %1292 = vrot.lane.b32.xlu1 %v1290_v27, %s2651_s4 }
0x1c49   :  { %v1293_v29 = vpop.permute.xlu1 %1292 }
0x1c4a   :  { %v1295_v30 = vadd.f32 %v1293_v29, %v1285_v12 }
0x1c4c   :  { %2494 = vtanh.f32 %v1295_v30 }
0x1c56   :  { %v2495_v32 = vpop.eup %2494 }
0x1c57   :  { %1298 = vrot.lane.b32.xlu0 %v2495_v32, %s2650_s24 }
0x1cc9   :  { %v1299_v33 = vpop.permute.xlu0 %1298 }
0x1cca   :  { %v1301_v35 = vmul.f32 %v2493_v26, %v1299_v33 }
0x1ccc   :  { %v1302_v36 = vadd.f32 %v1301_v35, %v2830_v21 }
0x1cce   :  { %1304 = vrot.lane.b32.xlu1 %v1302_v36, %s2651_s4 }
0x1d40   :  { %v1305_v38 = vpop.permute.xlu1 %1304 }
0x1d41   :  { %1711 = vmatmul.mubr.msk.f32.vlgmr.msra.gmra.mrb[12].mxu0 %vm114_vm0, %v1305_v38 }
0x1d42   :  { %2355 = vmatpush3.bf16.msra.mxu0 %v2773_v28  ;;  %2109 = vmatprep.mubr.msk.f32.mxu0 %vm2649_vm2, %v2647_v0 }
0x1d43   :  { %2356 = vmatprep.subr.bf16.mxu0 %v2648_v22 }
0x1d46   :  { %2358 = vmatpush3.bf16.msra.mxu0 %v2779_v31 }
0x1d47   :  { %2359 = vmatprep.subr.bf16.mxu0 %v2648_v22 }
0x1d4a   :  { %2361 = vmatpush3.bf16.msra.mxu0 %v2785_v34 }
0x1d4b   :  { %2362 = vmatprep.subr.bf16.mxu0 %v2648_v22 }
0x1d4e   :  { %2364 = vmatpush3.bf16.msra.mxu0 %v2789_v37 }
0x1d4f   :  { %2365 = vmatprep.subr.bf16.mxu0 %v2648_v22 }
0x1d52   :  { %2367 = vmatpush3.bf16.msra.mxu0 %v2793_v40 }
0x1d53   :  { %2368 = vmatprep.subr.bf16.mxu0 %v2648_v22 }
0x1d56   :  { %2370 = vmatpush3.bf16.msra.mxu0 %v2799_v48 }
0x1d57   :  { %2371 = vmatprep.subr.bf16.mxu0 %v2648_v22 }
0x1d5a   :  { %2373 = vmatpush3.bf16.msra.mxu0 %v2802_v51 }
0x1d5b   :  { %2374 = vmatprep.subr.bf16.mxu0 %v2648_v22 }
0x1d5e   :  { %2376 = vmatpush3.bf16.msra.mxu0 %v2806_v54 }
0x1e14   :  { %v1374_v39 = vpop.f32.mrb[12].mxu0 }
0x1e15   :  { %v1379_v41 = vadd.f32 %v2762_v14, %v1374_v39  ;;  %v1376_v42 = vpop.f32.mrb[13].mxu0 }
0x1e17   :  { %v1380_v43 = vsel %vm266_vm1, %v1379_v41, -inf }
0x1e18   :  { %1381 = vmax.xlane.f32.xlu0 %v1380_v43 }
0x1ea5   :  { %v1382_v44 = vpop.xlane.xlu0 %1381 }
0x1ea6   :  { %v1383_v45 = vsub.f32 %v1379_v41, %v1382_v44 }
0x1ea8   :  { %v1384_v46 = vmul.f32 1.442695, %v1383_v45 }
0x1eaa   :  { %2496 = vpow2.f32 %v1384_v46 }
0x1eb4   :  { %v2497_v47 = vpop.eup %2496 }
0x1eb5   :  { %v1386_v49 = vsel %vm266_vm1, %v2497_v47, 0.0 }
0x1eb6   :  { %1387 = vadd.xlane.f32.xlu1 %v1386_v49 }
0x1f43   :  { %v1388_v50 = vpop.xlane.xlu1 %1387 }
0x1f44   :  { %2498 = vrcp.f32 %v1388_v50 }
0x1f4e   :  { %v2499_v52 = vpop.eup %2498 }
0x1f4f   :  { %v1390_v53 = vmul.f32 %v2499_v52, %v2497_v47 }
0x1f51   :  { %2110 = vmatmul.mubr.f32.vlgmr.msra.gmra.mrb[14].mxu0 %v1390_v53 }
0x2024   :  { %v1457_v55 = vpop.f32.mrb[14].mxu0 }
0x2025   :  { %v1461_v14 = vadd.f32 %v1457_v55, %v2819_v61  ;;  %v2111_v56 = vpop.f32.mrb[15].mxu0 }
0x2027   :  { %v1462_v57 = vadd.f32 %v1461_v14, %v1376_v42 }
0x2029   :  { %2500 = vtanh.f32 %v1462_v57  ;;  %v1712_v59 = vmul.f32 -1.442695, %v1462_v57 }
0x202b   :  { %2502 = vpow2.f32 %v1712_v59 }
0x2033   :  { %v2501_v58 = vpop.eup %2500 }
0x2034   :  { %1472 = vrot.lane.b32.xlu0 %v2501_v58, %s2650_s24 }
0x2035   :  { %v2503_v60 = vpop.eup %2502 }
0x2036   :  { %v1466_v62 = vadd.f32 1.0, %v2503_v60 }
0x2038   :  { %2504 = vrcp.f32 %v1466_v62 }
0x2042   :  { %v2505_v63 = vpop.eup %2504 }
0x2043   :  { %v1470_v3 = vmul.f32 %v2505_v63, %v1295_v30 }
0x20a6   :  { %v1473_v1 = vpop.permute.xlu0 %1472 }
0x20a7   :  { %v1475_v2 = vmul.f32 %v2505_v63, %v1473_v1 }
0x20a9   :  { %1477 = vrot.lane.b32.xlu1 %v1475_v2, %s2651_s4 }
0x211b   :  { %v1478_v5 = vpop.permute.xlu1 %1477 }
0x211c   :  { %v1480_v6 = vadd.f32 %v1478_v5, %v1470_v3 }
0x211e   :  { %2506 = vtanh.f32 %v1480_v6 }
0x2128   :  { %v2507_v7 = vpop.eup %2506 }
0x2129   :  { %1483 = vrot.lane.b32.xlu0 %v2507_v7, %s2650_s24 }
0x219b   :  { %v1484_v10 = vpop.permute.xlu0 %1483 }
0x219c   :  { %v1486_v11 = vmul.f32 %v2505_v63, %v1484_v10 }
0x219e   :  { %v1487_v15 = vadd.f32 %v1486_v11, %v2830_v21 }
0x21a0   :  { %1489 = vrot.lane.b32.xlu1 %v1487_v15, %s2651_s4 }
0x2212   :  { %v1490_v16 = vpop.permute.xlu1 %1489 }
0x2213   :  { %1713 = vmatmul.mubr.msk.f32.vlgmr.msra.gmra.mrb[14].mxu1 %vm114_vm0, %v1490_v16 }
0x2214   :  { %2387 = vmatpush3.bf16.msra.mxu1 %v2773_v28  ;;  %2144 = vmatprep.mubr.msk.f32.mxu1 %vm2649_vm2, %v2647_v0  ;;  %v2520_v28 = vld [vmem:[%s3089_s5] ss:$0 sm:$0xff]  ;;  %s2653_s5 = smov [#allocation10]  }
0x2215   :  { %2388 = vmatprep.subr.bf16.mxu1 %v2648_v22  ;;  %s1685_s28 = sshll.u32 %s2653_s5, 4  ;;  %s1686_s28 = int_to_ptr.vmem [resolvable:$true] %s1685_s28 }
0x2216   :  { %s2609_s29 = scalar_lea.vmem %s1686_s28, 32  ;;  %p2614_p5 = scmp.lt.s32.totalorder %s1686_s28, %s1686_s28 }
0x2217   :  { %p2610_p4 = scmp.ne.s32.totalorder %s1686_s28, %s2609_s29  ;;  %p2615_p6 = scmp.lt.s32.totalorder %s2609_s29, %s2609_s29 }
0x2218   :  { %2390 = vmatpush3.bf16.msra.mxu1 %v2779_v31 }
0x2219   :  { %2391 = vmatprep.subr.bf16.mxu1 %v2648_v22  ;;  %p2616_p7 = por %p2615_p6, %p2614_p5 }
0x221b   :  { %p2617_p8 = pnand %p2616_p7, %p2610_p4 }
0x221c   :  { %2393 = vmatpush3.bf16.msra.mxu1 %v2785_v34 }
0x221d   :  { %2394 = vmatprep.subr.bf16.mxu1 %v2648_v22 }
0x2220   :  { %2396 = vmatpush3.bf16.msra.mxu1 %v2789_v37 }
0x2221   :  { %2397 = vmatprep.subr.bf16.mxu1 %v2648_v22 }
0x2224   :  { %2399 = vmatpush3.bf16.msra.mxu1 %v2793_v40 }
0x2225   :  { %2400 = vmatprep.subr.bf16.mxu1 %v2648_v22 }
0x2228   :  { %2402 = vmatpush3.bf16.msra.mxu1 %v2799_v48 }
0x2229   :  { %2403 = vmatprep.subr.bf16.mxu1 %v2648_v22 }
0x222c   :  { %2405 = vmatpush3.bf16.msra.mxu1 %v2802_v51 }
0x222d   :  { %2406 = vmatprep.subr.bf16.mxu1 %v2648_v22 }
0x2230   :  { %2408 = vmatpush3.bf16.msra.mxu1 %v2806_v54 }
0x22e6   :  { %v1559_v0 = vpop.f32.mrb[14].mxu1 }
0x22e7   :  { %v1564_v31 = vadd.f32 %v2520_v28, %v1559_v0  ;;  %v1561_v34 = vpop.f32.mrb[15].mxu1 }
0x22e9   :  { %v1565_v37 = vsel %vm266_vm1, %v1564_v31, -inf }
0x22ea   :  { %1566 = vmax.xlane.f32.xlu0 %v1565_v37 }
0x2377   :  { %v1567_v40 = vpop.xlane.xlu0 %1566 }
0x2378   :  { %v1568_v48 = vsub.f32 %v1564_v31, %v1567_v40 }
0x237a   :  { %v1569_v17 = vmul.f32 1.442695, %v1568_v48 }
0x237c   :  { %2508 = vpow2.f32 %v1569_v17 }
0x2386   :  { %v2509_v18 = vpop.eup %2508 }
0x2387   :  { %v1571_v51 = vsel %vm266_vm1, %v2509_v18, 0.0 }
0x2388   :  { %1572 = vadd.xlane.f32.xlu1 %v1571_v51 }
0x2415   :  { %v1573_v22 = vpop.xlane.xlu1 %1572 }
0x2416   :  { %2510 = vrcp.f32 %v1573_v22 }
0x2420   :  { %v2511_v54 = vpop.eup %2510 }
0x2421   :  { %v1575_v4 = vmul.f32 %v2511_v54, %v2509_v18 }
0x2423   :  { %2145 = vmatmul.mubr.f32.vlgmr.msra.gmra.mrb[16].mxu1 %v1575_v4 }
0x24f6   :  { %v1642_v19 = vpop.f32.mrb[16].mxu1 }
0x24f7   :  { %v1646_v20 = vadd.f32 %v1642_v19, %v2819_v61  ;;  %v2146_v23 = vpop.f32.mrb[17].mxu1 }
0x24f9   :  { %v1647_v24 = vadd.f32 %v1646_v20, %v1561_v34 }
0x24fb   :  { %2512 = vtanh.f32 %v1647_v24  ;;  %v1714_v8 = vmul.f32 -1.442695, %v1647_v24 }
0x24fd   :  { %2514 = vpow2.f32 %v1714_v8 }
0x2505   :  { %v2513_v25 = vpop.eup %2512 }
0x2506   :  { %1657 = vrot.lane.b32.xlu0 %v2513_v25, %s2650_s24 }
0x2507   :  { %v2515_v13 = vpop.eup %2514 }
0x2508   :  { %v1651_v26 = vadd.f32 1.0, %v2515_v13 }
0x250a   :  { %2516 = vrcp.f32 %v1651_v26 }
0x2514   :  { %v2517_v9 = vpop.eup %2516 }
0x2515   :  { %v1655_v29 = vmul.f32 %v2517_v9, %v1480_v6 }
0x2578   :  { %v1658_v27 = vpop.permute.xlu0 %1657 }
0x2579   :  { %v1660_v12 = vmul.f32 %v2517_v9, %v1658_v27 }
0x257b   :  { %1662 = vrot.lane.b32.xlu1 %v1660_v12, %s2651_s4 }
0x25ed   :  { %v1663_v30 = vpop.permute.xlu1 %1662 }
0x25ee   :  { %v1665_v32 = vadd.f32 %v1663_v30, %v1655_v29 }
0x25f0   :  { %2518 = vtanh.f32 %v1665_v32 }
0x25fa   :  { %v2519_v61 = vpop.eup %2518 }
0x25fb   :  { %1668 = vrot.lane.b32.xlu0 %v2519_v61, %s2650_s24 }
0x266d   :  { %v1669_v33 = vpop.permute.xlu0 %1668 }
0x266e   :  { %v1671_v35 = vmul.f32 %v2517_v9, %v1669_v33 }
0x2670   :  { %v1672_v36 = vadd.f32 %v1671_v35, %v2830_v21 }
0x2672   :  { %1674 = vrot.lane.b32.xlu1 %v1672_v36, %s2651_s4 }
0x26e4   :  { %v1675_v38 = vpop.permute.xlu1 %1674 }
0x26e5   :  { %1678 = vst.msk [vmem:[#allocation10] sm:$0x3] %vm1677_vm3, %v1675_v38 }
0x26e6   :  { %2620 = shalt.err (!%p2617_p8)
}
0x26e7   :  { %s2621_s0 = scalar_lea.hbm %s3090_s6, 32 }
0x26e8   :  { %p2622_p9 = scmp.ne.s32.totalorder %s3090_s6, %s2621_s0  ;;  %p2625_p10 = scmp.lt.u32.totalorder %s2621_s0, %s3090_s6 }
0x26ea   :  { %p2627_p11 = pnand %p2625_p10, %p2622_p9 }
0x26ec   :  { %2630 = shalt.err (!%p2627_p11)
}
0x26ed   :  { %1688 = dma.vmem_to_hbm [thread:$0]  %s1686_s28, 32, %s3090_s6, [#allocation4]  }
0x26ee   :  { %2637 = dma.done.wait [#allocation4], 32  }
0x26ef   :  { %2638 = vsyncadd [#allocation4], 4294967264 }
0x26f0   :  { %1692 = vsyncpa [#allocation3], 1 }
0x26f1   :  { %1693 = vsyncpa [#allocation6], 1 }
0x26f2   :  { %1694 = vsyncpa [#allocation9], 1 }
0x26f3   :  { %1695 = vsyncpa [#allocation4], 1 }

</bundles_post_ra>
